<compile_context>
chip_gen: v6e
topology: v6e:2x2x1
jax: 0.10.0
libtpu: 0.0.40
codegen_flags: <defaults>
</compile_context>

<pallas_src>
import functools

import jax
import jax.numpy as jnp
from jax import lax
from jax.experimental import pallas as pl
from jax.experimental.pallas import tpu as pltpu


# -----------------------------------------------------------------------------
# Pallas kernel: fused (M,K)x(K,N) bf16 matmul + bias (+ReLU), f32 accumulation
# -----------------------------------------------------------------------------
def _matmul_bias_kernel(x_ref, w_ref, b_ref, o_ref, *, relu):
    acc = jnp.dot(x_ref[...], w_ref[...], preferred_element_type=jnp.float32)
    y = acc + b_ref[...]
    if relu:
        y = jnp.maximum(y, 0.0)
    o_ref[...] = y.astype(o_ref.dtype)


def _round_up(x, m):
    return (x + m - 1) // m * m


def matmul_bias(x, w, bias, *, relu, out_dtype=jnp.bfloat16):
    """y = relu?(x @ w + bias).  x:(M,K), w:(K,N) -> bf16 MXU, f32 accumulate.

    BN scale is expected to be pre-folded into `w`; only +bias (+ReLU) runs in
    the kernel epilogue (in f32)."""
    x = x.astype(jnp.bfloat16)
    w = w.astype(jnp.bfloat16)
    bias = bias.astype(jnp.float32)

    M, K = x.shape
    K2, N = w.shape
    assert K == K2

    # M tiling: big M -> 256-row tiles (v6e/v7x 256x256 MXU), small M -> one
    # tile rounded to 16 rows (bf16 sublane packing granule).
    if M >= 512:
        tm = 256
    elif M >= 128:
        tm = 128
    else:
        tm = _round_up(max(M, 16), 16)
    Mp = _round_up(M, tm)

    Np = _round_up(N, 128)
    tn = 256 if (Np % 256 == 0) else 128

    xp = x if Mp == M else jnp.pad(x, ((0, Mp - M), (0, 0)))
    wp = w if Np == N else jnp.pad(w, ((0, 0), (0, Np - N)))
    bp = (bias if Np == N else jnp.pad(bias, ((0, Np - N),))).reshape(1, Np)

    out = pl.pallas_call(
        functools.partial(_matmul_bias_kernel, relu=relu),
        out_shape=jax.ShapeDtypeStruct((Mp, Np), out_dtype),
        grid=(Mp // tm, Np // tn),
        in_specs=[
            pl.BlockSpec((tm, K), lambda i, j: (i, 0)),    # im2col activations
            pl.BlockSpec((K, tn), lambda i, j: (0, j)),    # BN-folded weights
            pl.BlockSpec((1, tn), lambda i, j: (0, j)),    # BN-folded bias
        ],
        out_specs=pl.BlockSpec((tm, tn), lambda i, j: (i, j)),
        compiler_params=pltpu.CompilerParams(
            dimension_semantics=("parallel", "parallel")),
    )(xp, wp, bp)

    if Mp == M and Np == N:
        return out
    return out[:M, :N]


# -----------------------------------------------------------------------------
# Conv = im2col (glue) + Pallas matmul; BN folded into weights at trace time
# -----------------------------------------------------------------------------
def _im2col(x, kh, kw, sh, sw, ph, pw):
    n, h, w, c = x.shape
    if ph or pw:
        x = jnp.pad(x, ((0, 0), (ph, ph), (pw, pw), (0, 0)))
    ho = (h + 2 * ph - kh) // sh + 1
    wo = (w + 2 * pw - kw) // sw + 1
    # TODO(synk): on v5e a direct-conv K-grid (shifted index_map + f32 VMEM
    # accumulator) would avoid materializing the kh*kw im2col copies in HBM.
    patches = [x[:, i:i + ho * sh:sh, j:j + wo * sw:sw, :]
               for i in range(kh) for j in range(kw)]
    cols = jnp.concatenate(patches, axis=-1)           # (N, Ho, Wo, kh*kw*C)
    return cols.reshape(n * ho * wo, kh * kw * c), (n, ho, wo)


def _fold_bn_into_weight(p, eps=1e-5):
    """Return (K,N) weight matrix with BN scale folded in (bf16) + f32 bias."""
    gamma, beta, mean, var = p["bn"]
    scale = gamma / jnp.sqrt(var + eps)
    bias = beta - mean * scale
    cout, cin, kh, kw = p["w"].shape
    wmat = jnp.transpose(p["w"], (2, 3, 1, 0)).reshape(kh * kw * cin, cout)
    wmat = wmat * scale[None, :]
    return wmat.astype(jnp.bfloat16), bias.astype(jnp.float32), (kh, kw)


def bn_conv_apply(x, p, stride, padding, *, relu=True, out_dtype=jnp.bfloat16):
    """BN_Conv2d (inference): conv -> folded-BN -> ReLU, one Pallas matmul."""
    wmat, bias, (kh, kw) = _fold_bn_into_weight(p)
    cols, (n, ho, wo) = _im2col(x, kh, kw, stride[0], stride[1],
                                padding[0], padding[1])
    y = matmul_bias(cols, wmat, bias, relu=relu, out_dtype=out_dtype)
    return y.reshape(n, ho, wo, -1)


def fused_1x1_heads(x, plist, *, out_dtype=jnp.bfloat16):
    """Several 1x1-stride-1 BN_Conv2d sharing the same input -> ONE wide-N
    matmul (weights concatenated along N); returns the per-branch outputs."""
    n, h, w, c = x.shape
    mats, biases, widths = [], [], []
    for p in plist:
        wmat, bias, (kh, kw) = _fold_bn_into_weight(p)
        assert kh == 1 and kw == 1
        mats.append(wmat)
        biases.append(bias)
        widths.append(wmat.shape[1])
    wcat = jnp.concatenate(mats, axis=1)
    bcat = jnp.concatenate(biases, axis=0)
    y = matmul_bias(x.reshape(n * h * w, c), wcat, bcat,
                    relu=True, out_dtype=out_dtype)
    y = y.reshape(n, h, w, -1)
    outs, off = [], 0
    for s in widths:
        outs.append(y[..., off:off + s])
        off += s
    return outs


# -----------------------------------------------------------------------------
# Deterministic parameter construction (no checkpoint loading)
# -----------------------------------------------------------------------------
class ParamGen:
    def __init__(self, key):
        self.key = key

    def _next(self):
        self.key, k = jax.random.split(self.key)
        return k

    def bn_conv(self, cin, cout, kh, kw):
        fan_in = cin * kh * kw
        w = jax.random.normal(self._next(), (cout, cin, kh, kw),
                              jnp.float32) * jnp.sqrt(2.0 / fan_in)
        gamma = 1.0 + 0.1 * jax.random.normal(self._next(), (cout,), jnp.float32)
        beta = 0.1 * jax.random.normal(self._next(), (cout,), jnp.float32)
        mean = 0.1 * jax.random.normal(self._next(), (cout,), jnp.float32)
        var = 1.0 + 0.1 * jax.random.uniform(self._next(), (cout,), jnp.float32)
        return dict(w=w, bn=(gamma, beta, mean, var))


def make_params(in_channels, b2_n1, b2_n3, b3_n1, b3_n3,
                b4_n1, b4_n3_1, b4_n3_2, key):
    g = ParamGen(key)
    return dict(
        b2_1=g.bn_conv(in_channels, b2_n1, 1, 1),
        b2_2=g.bn_conv(b2_n1, b2_n3, 3, 3),
        b3_1=g.bn_conv(in_channels, b3_n1, 1, 1),
        b3_2=g.bn_conv(b3_n1, b3_n3, 3, 3),
        b4_1=g.bn_conv(in_channels, b4_n1, 1, 1),
        b4_2=g.bn_conv(b4_n1, b4_n3_1, 3, 3),
        b4_3=g.bn_conv(b4_n3_1, b4_n3_2, 3, 3),
    )


# -----------------------------------------------------------------------------
# Reduction_B_Res forward (eval mode)
# -----------------------------------------------------------------------------
def reduction_b_res_forward(x_nchw, params):
    # NCHW -> NHWC once; bf16 activations for the conv branches, f32 kept for
    # the max-pool branch so its values match the input exactly.
    x_f32 = jnp.transpose(x_nchw, (0, 2, 3, 1)).astype(jnp.float32)
    x = x_f32.astype(jnp.bfloat16)

    # out1 = F.max_pool2d(x, 3, 2, 0)
    # TODO(synk): max-pool kept as XLA reduce_window glue (memory-light VPU
    # op); not worth a dedicated Pallas kernel for this module.
    out1 = lax.reduce_window(x_f32, -jnp.inf, lax.max,
                             (1, 3, 3, 1), (1, 2, 2, 1), "VALID")

    # The three 1x1 branch heads share the same input -> one wide-N matmul.
    t2, t3, t4 = fused_1x1_heads(
        x, [params["b2_1"], params["b3_1"], params["b4_1"]])

    # branch2: 1x1 (done) -> 3x3 s2 p0
    out2 = bn_conv_apply(t2, params["b2_2"], (2, 2), (0, 0),
                         out_dtype=jnp.float32)
    # branch3: 1x1 (done) -> 3x3 s2 p0
    out3 = bn_conv_apply(t3, params["b3_2"], (2, 2), (0, 0),
                         out_dtype=jnp.float32)
    # branch4: 1x1 (done) -> 3x3 s1 p1 -> 3x3 s2 p0
    t4 = bn_conv_apply(t4, params["b4_2"], (1, 1), (1, 1))
    out4 = bn_conv_apply(t4, params["b4_3"], (2, 2), (0, 0),
                         out_dtype=jnp.float32)

    out = jnp.concatenate([out1, out2, out3, out4], axis=-1)
    return jnp.transpose(out, (0, 3, 1, 2))       # back to NCHW, f32


if __name__ == "__main__":
    # Small but representative shapes.
    batch, in_channels, spatial = 2, 32, 16
    b2_n1, b2_n3 = 32, 48
    b3_n1, b3_n3 = 32, 48
    b4_n1, b4_n3_1, b4_n3_2 = 32, 48, 64

    key = jax.random.PRNGKey(0)
    k_params, k_x = jax.random.split(key)
    params = make_params(in_channels, b2_n1, b2_n3, b3_n1, b3_n3,
                         b4_n1, b4_n3_1, b4_n3_2, k_params)

    # NCHW input, matching the PyTorch module's convention.
    x = jax.random.normal(k_x, (batch, in_channels, spatial, spatial),
                          jnp.float32)

    fwd = jax.jit(lambda xx: reduction_b_res_forward(xx, params))
    out = fwd(x)
    jax.block_until_ready(out)

    ho = (spatial - 3) // 2 + 1
    cout = in_channels + b2_n3 + b3_n3 + b4_n3_2
    assert out.shape == (batch, cout, ho, ho), out.shape
    assert bool(jnp.all(jnp.isfinite(out)))
    print("KERNEL_OK")
</pallas_src>

<mosaic_0001>
module attributes {stable_mosaic.version = 11 : i64} {
  func.func @_matmul_bias_kernel(%arg0: i32, %arg1: i32, %arg2: memref<256x32xbf16, #tpu.memory_space<vmem>>, %arg3: memref<32x128xbf16, #tpu.memory_space<vmem>>, %arg4: memref<1x128xf32, #tpu.memory_space<vmem>>, %arg5: memref<256x128xbf16, #tpu.memory_space<vmem>>) attributes {dimension_semantics = [#tpu.dimension_semantics<parallel>, #tpu.dimension_semantics<parallel>], iteration_bounds = array<i64: 2, 1>, scalar_prefetch = 0 : i64, scratch_operands = 0 : i64, tpu.core_type = #tpu.core_type<tc>, window_params = [{transform_indices = @transform_0, window_bounds = array<i64: 256, 32>}, {transform_indices = @transform_1, window_bounds = array<i64: 32, 128>}, {transform_indices = @transform_2, window_bounds = array<i64: 1, 128>}, {transform_indices = @transform_3, window_bounds = array<i64: 256, 128>}]} {
    %c0 = arith.constant 0 : index
    %c0_0 = arith.constant 0 : index
    %0 = vector.load %arg2[%c0, %c0_0] : memref<256x32xbf16, #tpu.memory_space<vmem>>, vector<256x32xbf16>
    %c0_1 = arith.constant 0 : index
    %c0_2 = arith.constant 0 : index
    %1 = vector.load %arg3[%c0_1, %c0_2] : memref<32x128xbf16, #tpu.memory_space<vmem>>, vector<32x128xbf16>
    %cst = arith.constant dense<0.000000e+00> : vector<256x128xf32>
    %2 = tpu.matmul %0, %1, %cst {dimension_numbers = #tpu.dot_dimension_numbers<[1], [0], [0], [1], [0, 0, 1, 1], [], []>} : vector<256x32xbf16>, vector<32x128xbf16>, vector<256x128xf32> -> vector<256x128xf32>
    %c0_3 = arith.constant 0 : index
    %c0_4 = arith.constant 0 : index
    %3 = vector.load %arg4[%c0_3, %c0_4] : memref<1x128xf32, #tpu.memory_space<vmem>>, vector<1x128xf32>
    %4 = vector.broadcast %3 : vector<1x128xf32> to vector<256x128xf32>
    %5 = arith.addf %2, %4 : vector<256x128xf32>
    %cst_5 = arith.constant 0.000000e+00 : f32
    %6 = vector.broadcast %cst_5 : f32 to vector<256x128xf32>
    %7 = arith.maximumf %5, %6 : vector<256x128xf32>
    %8 = arith.truncf %7 : vector<256x128xf32> to vector<256x128xbf16>
    %c0_6 = arith.constant 0 : index
    %c0_7 = arith.constant 0 : index
    %9 = vector.load %arg5[%c0_6, %c0_7] : memref<256x128xbf16, #tpu.memory_space<vmem>>, vector<256x128xbf16>
    tpu.vector_store %arg5[%c0_6, %c0_7], %8 {strides = array<i32>} : memref<256x128xbf16, #tpu.memory_space<vmem>>, vector<256x128xbf16>,
    return
  }
  func.func @transform_0(%arg0: i32, %arg1: i32) -> (i32, i32) {
    %c0_i32 = arith.constant 0 : i32
    %c0_i32_0 = arith.constant 0 : i32
    return %arg0, %c0_i32 : i32, i32
  }
  func.func @transform_1(%arg0: i32, %arg1: i32) -> (i32, i32) {
    %c0_i32 = arith.constant 0 : i32
    %c0_i32_0 = arith.constant 0 : i32
    return %c0_i32, %arg1 : i32, i32
  }
  func.func @transform_2(%arg0: i32, %arg1: i32) -> (i32, i32) {
    %c0_i32 = arith.constant 0 : i32
    %c0_i32_0 = arith.constant 0 : i32
    return %c0_i32, %arg1 : i32, i32
  }
  func.func @transform_3(%arg0: i32, %arg1: i32) -> (i32, i32) {
    %c0_i32 = arith.constant 0 : i32
    return %arg0, %arg1 : i32, i32
  }
}

module attributes {stable_mosaic.version = 11 : i64} {
  func.func @_matmul_bias_kernel(%arg0: i32, %arg1: i32, %arg2: memref<112x288xbf16, #tpu.memory_space<vmem>>, %arg3: memref<288x128xbf16, #tpu.memory_space<vmem>>, %arg4: memref<1x128xf32, #tpu.memory_space<vmem>>, %arg5: memref<112x128xf32, #tpu.memory_space<vmem>>) attributes {dimension_semantics = [#tpu.dimension_semantics<parallel>, #tpu.dimension_semantics<parallel>], iteration_bounds = array<i64: 1, 1>, scalar_prefetch = 0 : i64, scratch_operands = 0 : i64, tpu.core_type = #tpu.core_type<tc>, window_params = [{transform_indices = @transform_0, window_bounds = array<i64: 112, 288>}, {transform_indices = @transform_1, window_bounds = array<i64: 288, 128>}, {transform_indices = @transform_2, window_bounds = array<i64: 1, 128>}, {transform_indices = @transform_3, window_bounds = array<i64: 112, 128>}]} {
    %c0 = arith.constant 0 : index
    %c0_0 = arith.constant 0 : index
    %0 = vector.load %arg2[%c0, %c0_0] : memref<112x288xbf16, #tpu.memory_space<vmem>>, vector<112x288xbf16>
    %c0_1 = arith.constant 0 : index
    %c0_2 = arith.constant 0 : index
    %1 = vector.load %arg3[%c0_1, %c0_2] : memref<288x128xbf16, #tpu.memory_space<vmem>>, vector<288x128xbf16>
    %cst = arith.constant dense<0.000000e+00> : vector<112x128xf32>
    %2 = tpu.matmul %0, %1, %cst {dimension_numbers = #tpu.dot_dimension_numbers<[1], [0], [0], [1], [0, 0, 1, 1], [], []>} : vector<112x288xbf16>, vector<288x128xbf16>, vector<112x128xf32> -> vector<112x128xf32>
    %c0_3 = arith.constant 0 : index
    %c0_4 = arith.constant 0 : index
    %3 = vector.load %arg4[%c0_3, %c0_4] : memref<1x128xf32, #tpu.memory_space<vmem>>, vector<1x128xf32>
    %4 = vector.broadcast %3 : vector<1x128xf32> to vector<112x128xf32>
    %5 = arith.addf %2, %4 : vector<112x128xf32>
    %cst_5 = arith.constant 0.000000e+00 : f32
    %6 = vector.broadcast %cst_5 : f32 to vector<112x128xf32>
    %7 = arith.maximumf %5, %6 : vector<112x128xf32>
    %c0_6 = arith.constant 0 : index
    %c0_7 = arith.constant 0 : index
    %8 = vector.load %arg5[%c0_6, %c0_7] : memref<112x128xf32, #tpu.memory_space<vmem>>, vector<112x128xf32>
    tpu.vector_store %arg5[%c0_6, %c0_7], %7 {strides = array<i32>} : memref<112x128xf32, #tpu.memory_space<vmem>>, vector<112x128xf32>,
    return
  }
  func.func @transform_0(%arg0: i32, %arg1: i32) -> (i32, i32) {
    %c0_i32 = arith.constant 0 : i32
    %c0_i32_0 = arith.constant 0 : i32
    return %arg0, %c0_i32 : i32, i32
  }
  func.func @transform_1(%arg0: i32, %arg1: i32) -> (i32, i32) {
    %c0_i32 = arith.constant 0 : i32
    %c0_i32_0 = arith.constant 0 : i32
    return %c0_i32, %arg1 : i32, i32
  }
  func.func @transform_2(%arg0: i32, %arg1: i32) -> (i32, i32) {
    %c0_i32 = arith.constant 0 : i32
    %c0_i32_0 = arith.constant 0 : i32
    return %c0_i32, %arg1 : i32, i32
  }
  func.func @transform_3(%arg0: i32, %arg1: i32) -> (i32, i32) {
    %c0_i32 = arith.constant 0 : i32
    return %arg0, %arg1 : i32, i32
  }
}

module attributes {stable_mosaic.version = 11 : i64} {
  func.func @_matmul_bias_kernel(%arg0: i32, %arg1: i32, %arg2: memref<256x288xbf16, #tpu.memory_space<vmem>>, %arg3: memref<288x128xbf16, #tpu.memory_space<vmem>>, %arg4: memref<1x128xf32, #tpu.memory_space<vmem>>, %arg5: memref<256x128xbf16, #tpu.memory_space<vmem>>) attributes {dimension_semantics = [#tpu.dimension_semantics<parallel>, #tpu.dimension_semantics<parallel>], iteration_bounds = array<i64: 2, 1>, scalar_prefetch = 0 : i64, scratch_operands = 0 : i64, tpu.core_type = #tpu.core_type<tc>, window_params = [{transform_indices = @transform_0, window_bounds = array<i64: 256, 288>}, {transform_indices = @transform_1, window_bounds = array<i64: 288, 128>}, {transform_indices = @transform_2, window_bounds = array<i64: 1, 128>}, {transform_indices = @transform_3, window_bounds = array<i64: 256, 128>}]} {
    %c0 = arith.constant 0 : index
    %c0_0 = arith.constant 0 : index
    %0 = vector.load %arg2[%c0, %c0_0] : memref<256x288xbf16, #tpu.memory_space<vmem>>, vector<256x288xbf16>
    %c0_1 = arith.constant 0 : index
    %c0_2 = arith.constant 0 : index
    %1 = vector.load %arg3[%c0_1, %c0_2] : memref<288x128xbf16, #tpu.memory_space<vmem>>, vector<288x128xbf16>
    %cst = arith.constant dense<0.000000e+00> : vector<256x128xf32>
    %2 = tpu.matmul %0, %1, %cst {dimension_numbers = #tpu.dot_dimension_numbers<[1], [0], [0], [1], [0, 0, 1, 1], [], []>} : vector<256x288xbf16>, vector<288x128xbf16>, vector<256x128xf32> -> vector<256x128xf32>
    %c0_3 = arith.constant 0 : index
    %c0_4 = arith.constant 0 : index
    %3 = vector.load %arg4[%c0_3, %c0_4] : memref<1x128xf32, #tpu.memory_space<vmem>>, vector<1x128xf32>
    %4 = vector.broadcast %3 : vector<1x128xf32> to vector<256x128xf32>
    %5 = arith.addf %2, %4 : vector<256x128xf32>
    %cst_5 = arith.constant 0.000000e+00 : f32
    %6 = vector.broadcast %cst_5 : f32 to vector<256x128xf32>
    %7 = arith.maximumf %5, %6 : vector<256x128xf32>
    %8 = arith.truncf %7 : vector<256x128xf32> to vector<256x128xbf16>
    %c0_6 = arith.constant 0 : index
    %c0_7 = arith.constant 0 : index
    %9 = vector.load %arg5[%c0_6, %c0_7] : memref<256x128xbf16, #tpu.memory_space<vmem>>, vector<256x128xbf16>
    tpu.vector_store %arg5[%c0_6, %c0_7], %8 {strides = array<i32>} : memref<256x128xbf16, #tpu.memory_space<vmem>>, vector<256x128xbf16>,
    return
  }
  func.func @transform_0(%arg0: i32, %arg1: i32) -> (i32, i32) {
    %c0_i32 = arith.constant 0 : i32
    %c0_i32_0 = arith.constant 0 : i32
    return %arg0, %c0_i32 : i32, i32
  }
  func.func @transform_1(%arg0: i32, %arg1: i32) -> (i32, i32) {
    %c0_i32 = arith.constant 0 : i32
    %c0_i32_0 = arith.constant 0 : i32
    return %c0_i32, %arg1 : i32, i32
  }
  func.func @transform_2(%arg0: i32, %arg1: i32) -> (i32, i32) {
    %c0_i32 = arith.constant 0 : i32
    %c0_i32_0 = arith.constant 0 : i32
    return %c0_i32, %arg1 : i32, i32
  }
  func.func @transform_3(%arg0: i32, %arg1: i32) -> (i32, i32) {
    %c0_i32 = arith.constant 0 : i32
    return %arg0, %arg1 : i32, i32
  }
}

module attributes {stable_mosaic.version = 11 : i64} {
  func.func @_matmul_bias_kernel(%arg0: i32, %arg1: i32, %arg2: memref<112x432xbf16, #tpu.memory_space<vmem>>, %arg3: memref<432x128xbf16, #tpu.memory_space<vmem>>, %arg4: memref<1x128xf32, #tpu.memory_space<vmem>>, %arg5: memref<112x128xf32, #tpu.memory_space<vmem>>) attributes {dimension_semantics = [#tpu.dimension_semantics<parallel>, #tpu.dimension_semantics<parallel>], iteration_bounds = array<i64: 1, 1>, scalar_prefetch = 0 : i64, scratch_operands = 0 : i64, tpu.core_type = #tpu.core_type<tc>, window_params = [{transform_indices = @transform_0, window_bounds = array<i64: 112, 432>}, {transform_indices = @transform_1, window_bounds = array<i64: 432, 128>}, {transform_indices = @transform_2, window_bounds = array<i64: 1, 128>}, {transform_indices = @transform_3, window_bounds = array<i64: 112, 128>}]} {
    %c0 = arith.constant 0 : index
    %c0_0 = arith.constant 0 : index
    %0 = vector.load %arg2[%c0, %c0_0] : memref<112x432xbf16, #tpu.memory_space<vmem>>, vector<112x432xbf16>
    %c0_1 = arith.constant 0 : index
    %c0_2 = arith.constant 0 : index
    %1 = vector.load %arg3[%c0_1, %c0_2] : memref<432x128xbf16, #tpu.memory_space<vmem>>, vector<432x128xbf16>
    %cst = arith.constant dense<0.000000e+00> : vector<112x128xf32>
    %2 = tpu.matmul %0, %1, %cst {dimension_numbers = #tpu.dot_dimension_numbers<[1], [0], [0], [1], [0, 0, 1, 1], [], []>} : vector<112x432xbf16>, vector<432x128xbf16>, vector<112x128xf32> -> vector<112x128xf32>
    %c0_3 = arith.constant 0 : index
    %c0_4 = arith.constant 0 : index
    %3 = vector.load %arg4[%c0_3, %c0_4] : memref<1x128xf32, #tpu.memory_space<vmem>>, vector<1x128xf32>
    %4 = vector.broadcast %3 : vector<1x128xf32> to vector<112x128xf32>
    %5 = arith.addf %2, %4 : vector<112x128xf32>
    %cst_5 = arith.constant 0.000000e+00 : f32
    %6 = vector.broadcast %cst_5 : f32 to vector<112x128xf32>
    %7 = arith.maximumf %5, %6 : vector<112x128xf32>
    %c0_6 = arith.constant 0 : index
    %c0_7 = arith.constant 0 : index
    %8 = vector.load %arg5[%c0_6, %c0_7] : memref<112x128xf32, #tpu.memory_space<vmem>>, vector<112x128xf32>
    tpu.vector_store %arg5[%c0_6, %c0_7], %7 {strides = array<i32>} : memref<112x128xf32, #tpu.memory_space<vmem>>, vector<112x128xf32>,
    return
  }
  func.func @transform_0(%arg0: i32, %arg1: i32) -> (i32, i32) {
    %c0_i32 = arith.constant 0 : i32
    %c0_i32_0 = arith.constant 0 : i32
    return %arg0, %c0_i32 : i32, i32
  }
  func.func @transform_1(%arg0: i32, %arg1: i32) -> (i32, i32) {
    %c0_i32 = arith.constant 0 : i32
    %c0_i32_0 = arith.constant 0 : i32
    return %c0_i32, %arg1 : i32, i32
  }
  func.func @transform_2(%arg0: i32, %arg1: i32) -> (i32, i32) {
    %c0_i32 = arith.constant 0 : i32
    %c0_i32_0 = arith.constant 0 : i32
    return %c0_i32, %arg1 : i32, i32
  }
  func.func @transform_3(%arg0: i32, %arg1: i32) -> (i32, i32) {
    %c0_i32 = arith.constant 0 : i32
    return %arg0, %arg1 : i32, i32
  }
}

</mosaic_0001>

<bundles_post_ra>
// kernel: _lambda_.5
= control target key start
LH: loop header
LB: loop body
LE: loop exit
PB: predicated region body
PF: predicated region fallthrough
CT: control target
= control target key end

     0   :  { %s1216_s12 = smov 0   ;;  %s1218_s13 = smov 0   ;;  %s1351_s0 = inlined_call_operand.vmem [shape: bf16[512,32], index: 0, kind: input, shape index: {}]   ;;  %s1352_s1 = inlined_call_operand.vmem [shape: bf16[32,128], index: 1, kind: input, shape index: {}]   ;;  %s1353_s2 = inlined_call_operand.vmem [shape: f32[1,128], index: 2, kind: input, shape index: {}]   ;;  %s1354_s3 = inlined_call_operand.vmem [shape: bf16[512,128], index: 3, kind: output, shape index: {}]  }
   0x1   :  { %s1220_s14 = smov 0  }
   0x2 LB: > { %s25_s15 = sadd.s32 1, %s1190_s13  ;;  %p871_p0 = scmp.ge.s32.totalorder %s1194_s14, 1  ;;  %s1194_s14 = sphi %s1220_s14, %s13_s14   ;;  %s1190_s13 = sphi %s1218_s13, %s1356_s13   ;;  %s1186_s12 = sphi %s1216_s12, %s1355_s12  }
   0x3   : > { %p27_p1 = scmp.ge.s32.totalorder %s25_s15, 2  ;;  %p169_p2 = scmp.lt.s32.totalorder %s1194_s14, 3 }
   0x5   : > { %s1358_s15 = smov (%p27_p1, %s25_s15), 0  ;;  %p170_p3 = pnand %p871_p0, %p169_p2 }
   0x6   : > { %s872_s18 = sshll.u32 (!%p170_p3), %s1186_s12, 5 }
   0x7   : > { %173 = sbr.rel (%p170_p3) target bundleno = 251 (0xfb), region = 32  ;;  %p204_p4 = scmp.lt.s32.totalorder (!%p170_p3), %s872_s18, 63 }
   0xc   : > { %v1154_v0 = vld [vmem:[%s1352_s1 + $0x8] sm:$0xff]   ;;  %v1155_v1 = vld [vmem:[%s1352_s1] sm:$0xff]   ;;  %s1360_s18 = smov (!%p204_p4, %s872_s18), 63  ;;  %vm361_vm0 = vcmask 261120  }
   0xd   : > { %1090 = vmatprep.subr.bf16.mxu0 %v1154_v0  ;;  %1126 = vmatprep.subr.bf16.mxu1 %v1154_v0  ;;  %s873_s21 = sshll.u32 %s1360_s18, 2  ;;  %v1285_v19 = vld [vmem:[%s1353_s2] ss:$0 sm:$0xff] }
   0xe   : > { %1091 = vmatpush3.bf16.msra.mxu0 %v1154_v0  ;;  %1128 = vmatpush3.bf16.msra.mxu1 %v1154_v0  ;;  %s1248_s24 = scalar_lea.vmem %s1351_s0, %s873_s21  ;;  %s1299_s29 = scalar_lea.vmem %s1354_s3, %s873_s21 }
   0xf   : > { %1092 = vmatprep.subr.bf16.mxu0 %v1155_v1  ;;  %1127 = vmatprep.subr.bf16.mxu1 %v1155_v1  ;;  %v1156_v2 = vld [vmem:[%s1248_s24] sm:$0xff]   ;;  %v1158_v4 = vld [vmem:[%s1248_s24 + $0x8] sm:$0xff]   ;;  %v1160_v6 = vld [vmem:[%s1248_s24 + $0x10] sm:$0xff]  }
  0x10   : > { %v1157_v3 = vld [vmem:[%s1248_s24 + $0x40] sm:$0xff]   ;;  %1094 = vmatprep.mubr.msk.bf16.mxu0 %vm361_vm0, %v1156_v2  ;;  %v1159_v5 = vld [vmem:[%s1248_s24 + $0x48] sm:$0xff]   ;;  %v1161_v7 = vld [vmem:[%s1248_s24 + $0x50] sm:$0xff]  }
  0x11   : > { %1110 = vmatprep.mubr.msk.bf16.mxu1 %vm361_vm0, %v1157_v3  ;;  %v1162_v8 = vld [vmem:[%s1248_s24 + $0x18] sm:$0xff]   ;;  %v1164_v10 = vld [vmem:[%s1248_s24 + $0x20] sm:$0xff]   ;;  %v1166_v12 = vld [vmem:[%s1248_s24 + $0x28] sm:$0xff]  }
  0x12   : > { %1093 = vmatpush3.bf16.msra.mxu0 %v1155_v1  ;;  %1129 = vmatpush3.bf16.msra.mxu1 %v1155_v1  ;;  %v1163_v9 = vld [vmem:[%s1248_s24 + $0x58] sm:$0xff]   ;;  %v1165_v11 = vld [vmem:[%s1248_s24 + $0x60] sm:$0xff]   ;;  %v1167_v13 = vld [vmem:[%s1248_s24 + $0x68] sm:$0xff]  }
  0x13   : > { %v1168_v14 = vld [vmem:[%s1248_s24 + $0x30] sm:$0xff]   ;;  %v1170_v16 = vld [vmem:[%s1248_s24 + $0x38] sm:$0xff]  }
  0x14   : > { %v1169_v15 = vld [vmem:[%s1248_s24 + $0x70] sm:$0xff]   ;;  %v1171_v17 = vld [vmem:[%s1248_s24 + $0x78] sm:$0xff]  }
  0x15   : > { %1095 = vmatmul.mubr.msk.bf16.vlgmr.msra.gmra.mxu0 %vm361_vm0, %v1158_v4  ;;  %1111 = vmatmul.mubr.msk.bf16.vlgmr.msra.gmra.mxu1 %vm361_vm0, %v1159_v5 }
  0x16   : > { %1098 = vmatprep.mubr.msk.bf16.mxu0 %vm361_vm0, %v1160_v6  ;;  %1114 = vmatprep.mubr.msk.bf16.mxu1 %vm361_vm0, %v1161_v7 }
  0x1d   : > { %1099 = vmatmul.mubr.msk.bf16.gmra.mxu0 %vm361_vm0, %v1162_v8  ;;  %1115 = vmatmul.mubr.msk.bf16.gmra.mxu1 %vm361_vm0, %v1163_v9 }
  0x1e   : > { %1102 = vmatprep.mubr.msk.bf16.mxu0 %vm361_vm0, %v1164_v10  ;;  %1118 = vmatprep.mubr.msk.bf16.mxu1 %vm361_vm0, %v1165_v11 }
  0x25   : > { %1103 = vmatmul.mubr.msk.bf16.gmra.mxu0 %vm361_vm0, %v1166_v12  ;;  %1119 = vmatmul.mubr.msk.bf16.gmra.mxu1 %vm361_vm0, %v1167_v13 }
  0x26   : > { %1106 = vmatprep.mubr.msk.bf16.mxu0 %vm361_vm0, %v1168_v14  ;;  %1122 = vmatprep.mubr.msk.bf16.mxu1 %vm361_vm0, %v1169_v15 }
  0x2d   : > { %1107 = vmatmul.mubr.msk.bf16.gmra.mxu0 %vm361_vm0, %v1170_v16  ;;  %1123 = vmatmul.mubr.msk.bf16.gmra.mxu1 %vm361_vm0, %v1171_v17 }
  0xd5   : > { %v1096_v18 = vpop.f32.mrf.mxu0  ;;  %v1112_v20 = vpop.f32.mrf.mxu1 }
  0xd6   : > { %v453_v22 = vadd.f32 %v1096_v18, %v1285_v19  ;;  %v517_v24 = vadd.f32 %v1112_v20, %v1285_v19 }
  0xd7   : > { %v444_v21 = vpop.f32.mrf.mxu0  ;;  %v508_v23 = vpop.f32.mrf.mxu1 }
  0xd8   : > { %v445_v26 = vadd.f32 %v1285_v19, %v444_v21  ;;  %v509_v29 = vadd.f32 %v1285_v19, %v508_v23  ;;  %v573_v32 = vmax.f32 %v453_v22, 0.0  ;;  %v589_v36 = vmax.f32 %v517_v24, 0.0 }
  0xd9   : > { %v1097_v25 = vpop.f32.mrf.mxu0  ;;  %v1113_v28 = vpop.f32.mrf.mxu1 }
  0xda   : > { %v456_v27 = vadd.f32 %v1097_v25, %v1285_v19  ;;  %v520_v30 = vadd.f32 %v1113_v28, %v1285_v19  ;;  %v571_v40 = vmax.f32 %v445_v26, 0.0  ;;  %v587_v44 = vmax.f32 %v509_v29, 0.0 }
  0xdb   : > { %v447_v31 = vpop.f32.mrf.mxu0  ;;  %v511_v35 = vpop.f32.mrf.mxu1 }
  0xdc   : > { %v574_v33 = vmax.f32 %v456_v27, 0.0  ;;  %v448_v34 = vadd.f32 %v1285_v19, %v447_v31  ;;  %v590_v37 = vmax.f32 %v520_v30, 0.0  ;;  %v512_v38 = vadd.f32 %v1285_v19, %v511_v35 }
  0xdd   : > { %v1100_v39 = vpop.f32.mrf.mxu0  ;;  %v1116_v43 = vpop.f32.mrf.mxu1 }
  0xde   : > { %v985_v41 = vpack.c.bf16 %v574_v33, %v573_v32  ;;  %v572_v42 = vmax.f32 %v448_v34, 0.0  ;;  %v1025_v45 = vpack.c.bf16 %v590_v37, %v589_v36  ;;  %v588_v46 = vmax.f32 %v512_v38, 0.0 }
  0xdf   : > { %v460_v47 = vpop.f32.mrf.mxu0  ;;  %v469_v49 = vadd.f32 %v1100_v39, %v1285_v19  ;;  %v524_v50 = vpop.f32.mrf.mxu1  ;;  %v533_v52 = vadd.f32 %v1116_v43, %v1285_v19 }
  0xe0   : > { %1057 = vst [vmem:[%s1299_s29 + $0x8] sm:$0xff] %v985_v41   ;;  %v980_v48 = vpack.c.bf16 %v572_v42, %v571_v40  ;;  %1065 = vst [vmem:[%s1299_s29 + $0x48] sm:$0xff] %v1025_v45   ;;  %v1020_v51 = vpack.c.bf16 %v588_v46, %v587_v44  ;;  %v461_v54 = vadd.f32 %v1285_v19, %v460_v47 }
  0xe1   : > { %v1101_v53 = vpop.f32.mrf.mxu0  ;;  %v1117_v56 = vpop.f32.mrf.mxu1  ;;  %v525_v57 = vadd.f32 %v1285_v19, %v524_v50  ;;  %v577_v60 = vmax.f32 %v469_v49, 0.0  ;;  %v593_v0 = vmax.f32 %v533_v52, 0.0 }
  0xe2   : > { %981 = vst [vmem:[%s1299_s29] sm:$0xff] %v980_v48   ;;  %v472_v55 = vadd.f32 %v1101_v53, %v1285_v19  ;;  %1064 = vst [vmem:[%s1299_s29 + $0x40] sm:$0xff] %v1020_v51   ;;  %v536_v58 = vadd.f32 %v1117_v56, %v1285_v19  ;;  %v575_v4 = vmax.f32 %v461_v54, 0.0 }
  0xe3   : > { %v463_v59 = vpop.f32.mrf.mxu0  ;;  %v527_v63 = vpop.f32.mrf.mxu1  ;;  %v591_v8 = vmax.f32 %v525_v57, 0.0 }
  0xe4   : > { %v578_v61 = vmax.f32 %v472_v55, 0.0  ;;  %v464_v62 = vadd.f32 %v1285_v19, %v463_v59  ;;  %v594_v1 = vmax.f32 %v536_v58, 0.0  ;;  %v528_v2 = vadd.f32 %v1285_v19, %v527_v63 }
  0xe5   : > { %v1104_v3 = vpop.f32.mrf.mxu0  ;;  %v1120_v7 = vpop.f32.mrf.mxu1 }
  0xe6   : > { %v995_v5 = vpack.c.bf16 %v578_v61, %v577_v60  ;;  %v576_v6 = vmax.f32 %v464_v62, 0.0  ;;  %v1035_v9 = vpack.c.bf16 %v594_v1, %v593_v0  ;;  %v592_v10 = vmax.f32 %v528_v2, 0.0 }
  0xe7   : > { %v476_v11 = vpop.f32.mrf.mxu0  ;;  %v485_v13 = vadd.f32 %v1104_v3, %v1285_v19  ;;  %v540_v14 = vpop.f32.mrf.mxu1  ;;  %v549_v16 = vadd.f32 %v1120_v7, %v1285_v19 }
  0xe8   : > { %1059 = vst [vmem:[%s1299_s29 + $0x18] sm:$0xff] %v995_v5   ;;  %v990_v12 = vpack.c.bf16 %v576_v6, %v575_v4  ;;  %1067 = vst [vmem:[%s1299_s29 + $0x58] sm:$0xff] %v1035_v9   ;;  %v1030_v15 = vpack.c.bf16 %v592_v10, %v591_v8  ;;  %v477_v18 = vadd.f32 %v1285_v19, %v476_v11 }
  0xe9   : > { %v1105_v17 = vpop.f32.mrf.mxu0  ;;  %v1121_v21 = vpop.f32.mrf.mxu1  ;;  %v541_v22 = vadd.f32 %v1285_v19, %v540_v14  ;;  %v581_v25 = vmax.f32 %v485_v13, 0.0  ;;  %v597_v29 = vmax.f32 %v549_v16, 0.0 }
  0xea   : > { %1058 = vst [vmem:[%s1299_s29 + $0x10] sm:$0xff] %v990_v12   ;;  %v488_v20 = vadd.f32 %v1105_v17, %v1285_v19  ;;  %1066 = vst [vmem:[%s1299_s29 + $0x50] sm:$0xff] %v1030_v15   ;;  %v552_v23 = vadd.f32 %v1121_v21, %v1285_v19  ;;  %v579_v33 = vmax.f32 %v477_v18, 0.0 }
  0xeb   : > { %v479_v24 = vpop.f32.mrf.mxu0  ;;  %v543_v28 = vpop.f32.mrf.mxu1  ;;  %v595_v37 = vmax.f32 %v541_v22, 0.0 }
  0xec   : > { %v582_v26 = vmax.f32 %v488_v20, 0.0  ;;  %v480_v27 = vadd.f32 %v1285_v19, %v479_v24  ;;  %v598_v30 = vmax.f32 %v552_v23, 0.0  ;;  %v544_v31 = vadd.f32 %v1285_v19, %v543_v28 }
  0xed   : > { %v1108_v32 = vpop.f32.mrf.mxu0  ;;  %v1124_v36 = vpop.f32.mrf.mxu1 }
  0xee   : > { %v1005_v34 = vpack.c.bf16 %v582_v26, %v581_v25  ;;  %v580_v35 = vmax.f32 %v480_v27, 0.0  ;;  %v1045_v38 = vpack.c.bf16 %v598_v30, %v597_v29  ;;  %v596_v39 = vmax.f32 %v544_v31, 0.0 }
  0xef   : > { %v492_v40 = vpop.f32.mrf.mxu0  ;;  %v501_v42 = vadd.f32 %v1108_v32, %v1285_v19  ;;  %v556_v43 = vpop.f32.mrf.mxu1  ;;  %v565_v45 = vadd.f32 %v1124_v36, %v1285_v19 }
  0xf0   : > { %1061 = vst [vmem:[%s1299_s29 + $0x28] sm:$0xff] %v1005_v34   ;;  %v1000_v41 = vpack.c.bf16 %v580_v35, %v579_v33  ;;  %1069 = vst [vmem:[%s1299_s29 + $0x68] sm:$0xff] %v1045_v38   ;;  %v1040_v44 = vpack.c.bf16 %v596_v39, %v595_v37  ;;  %v493_v47 = vadd.f32 %v1285_v19, %v492_v40 }
  0xf1   : > { %v1109_v46 = vpop.f32.mrf.mxu0  ;;  %v1125_v49 = vpop.f32.mrf.mxu1  ;;  %v557_v50 = vadd.f32 %v1285_v19, %v556_v43  ;;  %v585_v53 = vmax.f32 %v501_v42, 0.0  ;;  %v601_v57 = vmax.f32 %v565_v45, 0.0 }
  0xf2   : > { %1060 = vst [vmem:[%s1299_s29 + $0x20] sm:$0xff] %v1000_v41   ;;  %v504_v48 = vadd.f32 %v1109_v46, %v1285_v19  ;;  %1068 = vst [vmem:[%s1299_s29 + $0x60] sm:$0xff] %v1040_v44   ;;  %v568_v51 = vadd.f32 %v1125_v49, %v1285_v19  ;;  %v583_v60 = vmax.f32 %v493_v47, 0.0 }
  0xf3   : > { %v495_v52 = vpop.f32.mrf.mxu0  ;;  %v559_v56 = vpop.f32.mrf.mxu1  ;;  %v599_v63 = vmax.f32 %v557_v50, 0.0 }
  0xf4   : > { %v586_v54 = vmax.f32 %v504_v48, 0.0  ;;  %v496_v55 = vadd.f32 %v1285_v19, %v495_v52  ;;  %v602_v58 = vmax.f32 %v568_v51, 0.0  ;;  %v560_v59 = vadd.f32 %v1285_v19, %v559_v56 }
  0xf6   : > { %v1015_v61 = vpack.c.bf16 %v586_v54, %v585_v53  ;;  %v584_v62 = vmax.f32 %v496_v55, 0.0  ;;  %v1055_v0 = vpack.c.bf16 %v602_v58, %v601_v57  ;;  %v600_v1 = vmax.f32 %v560_v59, 0.0 }
  0xf8   : > { %1063 = vst [vmem:[%s1299_s29 + $0x38] sm:$0xff] %v1015_v61   ;;  %v1010_v2 = vpack.c.bf16 %v584_v62, %v583_v60  ;;  %1071 = vst [vmem:[%s1299_s29 + $0x78] sm:$0xff] %v1055_v0   ;;  %v1050_v3 = vpack.c.bf16 %v600_v1, %v599_v63 }
  0xfa   : > { %1062 = vst [vmem:[%s1299_s29 + $0x30] sm:$0xff] %v1010_v2   ;;  %1070 = vst [vmem:[%s1299_s29 + $0x70] sm:$0xff] %v1050_v3  }
  0xfb PF: > { %s13_s14 = sadd.s32 1, %s1194_s14   ;;  %s1355_s12 = smov %s1190_s13 }
  0xfc   : > { %p10_p5 = scmp.ge.s32.totalorder %s13_s14, 4   ;;  %s1356_s13 = smov %s1358_s15 }
  0xfe   :  { %12 = sbr.rel (!%p10_p5) target bundleno = 2 (0x2), region = 68 }

// kernel: _lambda_.6
= control target key start
LH: loop header
LB: loop body
LE: loop exit
PB: predicated region body
PF: predicated region fallthrough
CT: control target
= control target key end

     0   :  { %v725_v1 = vmov 0.0   ;;  %vm726_vm0 = vmmov 0   ;;  %vm299_vm1 = vcmask 261120   ;;  %s948_s1 = inlined_call_operand.vmem [shape: bf16[288,128], index: 1, kind: input, shape index: {}]   ;;  %s949_s0 = inlined_call_operand.vmem [shape: bf16[112,288], index: 0, kind: input, shape index: {}]   ;;  %s950_s2 = inlined_call_operand.vmem [shape: f32[1,128], index: 2, kind: input, shape index: {}]   ;;  %s951_s3 = inlined_call_operand.vmem [shape: f32[112,128], index: 3, kind: output, shape index: {}]  }
   0x1   :  { %v679_v0 = vld [vmem:[%s948_s1 + $0x78] sm:$0xff]   ;;  %645 = vmatprep.subr.bf16.mxu1 %v725_v1  ;;  %649 = vmatprep.mubr.msk.bf16.mxu1 %vm726_vm0, %v725_v1  ;;  %v681_v3 = vld [vmem:[%s948_s1 + $0x70] sm:$0xff]   ;;  %v683_v5 = vld [vmem:[%s948_s1 + $0x68] sm:$0xff]  }
   0x2   :  { %v680_v2 = vld [vmem:[%s948_s1 + $0x38] sm:$0xff]   ;;  %578 = vmatprep.subr.bf16.mxu0 %v679_v0  ;;  %v682_v4 = vld [vmem:[%s948_s1 + $0x30] sm:$0xff]   ;;  %v684_v6 = vld [vmem:[%s948_s1 + $0x28] sm:$0xff]  }
   0x3   :  { %579 = vmatpush3.bf16.msra.mxu0 %v680_v2  ;;  %v685_v7 = vld [vmem:[%s948_s1 + $0x60] sm:$0xff]   ;;  %v687_v9 = vld [vmem:[%s948_s1 + $0x58] sm:$0xff]   ;;  %v693_v10 = vld [vmem:[%s948_s1 + $0x88] sm:$0xff]  }
   0x4   :  { %580 = vmatprep.subr.bf16.mxu0 %v681_v3  ;;  %v686_v8 = vld [vmem:[%s948_s1 + $0x20] sm:$0xff]   ;;  %v688_v11 = vld [vmem:[%s948_s1 + $0x18] sm:$0xff]   ;;  %v689_v12 = vld [vmem:[%s948_s1 + $0x50] sm:$0xff]   ;;  %646 = vmatpush3.bf16.msra.mxu1 %v693_v10 }
   0x5   :  { %v690_v13 = vld [vmem:[%s948_s1 + $0x10] sm:$0xff]   ;;  %647 = vmatprep.subr.bf16.mxu1 %v725_v1  ;;  %v696_v14 = vld [vmem:[%s948_s1 + $0x80] sm:$0xff]   ;;  %v691_v15 = vld [vmem:[%s948_s1 + $0x48] sm:$0xff]  }
   0x6   :  { %v699_v16 = vld [vmem:[%s949_s0 + $0x4] ss:$12 sps:$4 sm:$0xff]   ;;  %v700_v17 = vld [vmem:[%s949_s0 + $0x8] ss:$12 sps:$4 sm:$0xff]   ;;  %v704_v21 = vld [vmem:[%s949_s0 + $0x20] ss:$12 sps:$4 sm:$0xff]  }
   0x7   :  { %581 = vmatpush3.bf16.msra.mxu0 %v682_v4  ;;  %353 = vmatprep.mubr.bf16.mxu0 %v699_v16  ;;  %v692_v18 = vld [vmem:[%s948_s1 + $0x8] sm:$0xff]   ;;  %v694_v19 = vld [vmem:[%s948_s1 + $0x40] sm:$0xff]   ;;  %v712_v27 = vld [vmem:[%s949_s0 + $0x50] ss:$12 sps:$4 sm:$0xff]  }
   0x8   :  { %582 = vmatprep.subr.bf16.mxu0 %v683_v5  ;;  %648 = vmatpush3.bf16.msra.mxu1 %v696_v14  ;;  %v695_v20 = vld [vmem:[%s948_s1] sm:$0xff]   ;;  %v701_v23 = vld [vmem:[%s949_s0 + $0x1c] ss:$12 sps:$4 sm:$0xff]   ;;  %v709_v29 = vld [vmem:[%s949_s0 + $0x4c] ss:$12 sps:$4 sm:$0xff]  }
   0x9   :  { %v697_v22 = vld [vmem:[%s949_s0] ss:$12 sps:$4 sm:$0xff]   ;;  %v708_v24 = vld [vmem:[%s949_s0 + $0x38] ss:$12 sps:$4 sm:$0xff]   ;;  %v707_v28 = vld [vmem:[%s949_s0 + $0x30] ss:$12 sps:$4 sm:$0xff]  }
   0xa   :  { %v703_v25 = vld [vmem:[%s949_s0 + $0x18] ss:$12 sps:$4 sm:$0xff]   ;;  %v705_v26 = vld [vmem:[%s949_s0 + $0x34] ss:$12 sps:$4 sm:$0xff]   ;;  %v717_v35 = vld [vmem:[%s949_s0 + $0x7c] ss:$12 sps:$4 sm:$0xff]  }
   0xb   :  { %583 = vmatpush3.bf16.msra.mxu0 %v684_v6  ;;  %650 = vmatmul.mubr.msk.bf16.vlgmr.msra.gmra.mxu1 %vm299_vm1, %v700_v17  ;;  %v716_v30 = vld [vmem:[%s949_s0 + $0x68] ss:$12 sps:$4 sm:$0xff]   ;;  %v713_v32 = vld [vmem:[%s949_s0 + $0x64] ss:$12 sps:$4 sm:$0xff]   ;;  %v720_v33 = vld [vmem:[%s949_s0 + $0x80] ss:$12 sps:$4 sm:$0xff]  }
   0xc   :  { %584 = vmatprep.subr.bf16.mxu0 %v685_v7  ;;  %653 = vmatprep.mubr.msk.bf16.mxu1 %vm726_vm0, %v725_v1  ;;  %v711_v31 = vld [vmem:[%s949_s0 + $0x48] ss:$12 sps:$4 sm:$0xff]   ;;  %v715_v34 = vld [vmem:[%s949_s0 + $0x60] ss:$12 sps:$4 sm:$0xff]   ;;  %v724_v36 = vld [vmem:[%s949_s0 + $0x98] ss:$12 sps:$4 sm:$0xff]  }
   0xd   :  { %v719_v37 = vld [vmem:[%s949_s0 + $0x78] ss:$12 sps:$4 sm:$0xff]   ;;  %v721_v38 = vld [vmem:[%s949_s0 + $0x94] ss:$12 sps:$4 sm:$0xff]   ;;  %v723_v39 = vld [vmem:[%s949_s0 + $0x90] ss:$12 sps:$4 sm:$0xff]  }
   0xe   :  { %v890_v48 = vld [vmem:[%s950_s2] ss:$0 sm:$0xff] }
   0xf   :  { %585 = vmatpush3.bf16.msra.mxu0 %v686_v8 }
  0x10   :  { %586 = vmatprep.subr.bf16.mxu0 %v687_v9 }
  0x13   :  { %587 = vmatpush3.bf16.msra.mxu0 %v688_v11  ;;  %654 = vmatmul.mubr.msk.bf16.gmra.mxu1 %vm299_vm1, %v704_v21 }
  0x14   :  { %588 = vmatprep.subr.bf16.mxu0 %v689_v12  ;;  %657 = vmatprep.mubr.msk.bf16.mxu1 %vm726_vm0, %v725_v1 }
  0x17   :  { %589 = vmatpush3.bf16.msra.mxu0 %v690_v13 }
  0x18   :  { %590 = vmatprep.subr.bf16.mxu0 %v691_v15 }
  0x1b   :  { %591 = vmatpush3.bf16.msra.mxu0 %v692_v18  ;;  %658 = vmatmul.mubr.msk.bf16.gmra.mxu1 %vm299_vm1, %v708_v24 }
  0x1c   :  { %592 = vmatprep.subr.bf16.mxu0 %v694_v19  ;;  %661 = vmatprep.mubr.msk.bf16.mxu1 %vm726_vm0, %v725_v1 }
  0x1f   :  { %593 = vmatpush3.bf16.msra.mxu0 %v695_v20 }
  0x22   :  { %354 = vmatmul.mubr.bf16.vlgmr.msra.gmra.mxu0 %v697_v22 }
  0x23   :  { %361 = vmatprep.mubr.bf16.mxu0 %v701_v23  ;;  %662 = vmatmul.mubr.msk.bf16.gmra.mxu1 %vm299_vm1, %v712_v27 }
  0x24   :  { %665 = vmatprep.mubr.msk.bf16.mxu1 %vm726_vm0, %v725_v1 }
  0x2a   :  { %362 = vmatmul.mubr.bf16.gmra.mxu0 %v703_v25 }
  0x2b   :  { %369 = vmatprep.mubr.bf16.mxu0 %v705_v26  ;;  %666 = vmatmul.mubr.msk.bf16.gmra.mxu1 %vm299_vm1, %v716_v30 }
  0x2c   :  { %669 = vmatprep.mubr.msk.bf16.mxu1 %vm726_vm0, %v725_v1 }
  0x32   :  { %370 = vmatmul.mubr.bf16.gmra.mxu0 %v707_v28 }
  0x33   :  { %377 = vmatprep.mubr.bf16.mxu0 %v709_v29  ;;  %670 = vmatmul.mubr.msk.bf16.gmra.mxu1 %vm299_vm1, %v720_v33 }
  0x34   :  { %673 = vmatprep.mubr.msk.bf16.mxu1 %vm726_vm0, %v725_v1 }
  0x3a   :  { %378 = vmatmul.mubr.bf16.gmra.mxu0 %v711_v31 }
  0x3b   :  { %385 = vmatprep.mubr.bf16.mxu0 %v713_v32  ;;  %674 = vmatmul.mubr.msk.bf16.gmra.mxu1 %vm299_vm1, %v724_v36 }
  0x42   :  { %386 = vmatmul.mubr.bf16.gmra.mxu0 %v715_v34 }
  0x43   :  { %393 = vmatprep.mubr.bf16.mxu0 %v717_v35 }
  0x4a   :  { %394 = vmatmul.mubr.bf16.gmra.mxu0 %v719_v37 }
  0x4b   :  { %401 = vmatprep.mubr.bf16.mxu0 %v721_v38 }
  0x52   :  { %402 = vmatmul.mubr.bf16.gmra.mxu0 %v723_v39 }
  0xcb   :  { %v444_v40 = vpop.f32.mrf.mxu1 }
  0xcd   :  { %v651_v41 = vpop.f32.mrf.mxu1 }
  0xcf   :  { %v447_v42 = vpop.f32.mrf.mxu1 }
  0xd1   :  { %v652_v43 = vpop.f32.mrf.mxu1 }
  0xd3   :  { %v452_v44 = vpop.f32.mrf.mxu1 }
  0xd5   :  { %v655_v45 = vpop.f32.mrf.mxu1 }
  0xd7   :  { %v455_v47 = vpop.f32.mrf.mxu1 }
  0xd9   :  { %v656_v51 = vpop.f32.mrf.mxu1 }
  0xdb   :  { %v460_v54 = vpop.f32.mrf.mxu1 }
  0xdd   :  { %v659_v58 = vpop.f32.mrf.mxu1 }
  0xdf   :  { %v463_v62 = vpop.f32.mrf.mxu1 }
  0xe1   :  { %v660_v2 = vpop.f32.mrf.mxu1 }
  0xe2   :  { %v594_v46 = vpop.f32.mrf.mxu0 }
  0xe3   :  { %v468_v6 = vpop.f32.mrf.mxu1 }
  0xe4   :  { %v595_v49 = vpop.f32.mrf.mxu0 }
  0xe5   :  { %v596_v50 = vadd.f32 %v595_v49, %v594_v46  ;;  %v663_v10 = vpop.f32.mrf.mxu1 }
  0xe6   :  { %v597_v52 = vpop.f32.mrf.mxu0 }
  0xe7   :  { %v356_v53 = vadd.f32 %v596_v50, %v890_v48  ;;  %v471_v14 = vpop.f32.mrf.mxu1 }
  0xe8   :  { %v598_v55 = vpop.f32.mrf.mxu0 }
  0xe9   :  { %v445_v56 = vadd.f32 %v444_v40, %v356_v53  ;;  %v599_v57 = vadd.f32 %v598_v55, %v597_v52  ;;  %v664_v18 = vpop.f32.mrf.mxu1 }
  0xea   :  { %v600_v59 = vpop.f32.mrf.mxu0 }
  0xeb   :  { %v499_v60 = vmax.f32 %v445_v56, 0.0  ;;  %v359_v61 = vadd.f32 %v599_v57, %v890_v48  ;;  %v476_v22 = vpop.f32.mrf.mxu1 }
  0xec   :  { %v601_v63 = vpop.f32.mrf.mxu0 }
  0xed   :  { %513 = vst [vmem:[%s951_s3] sm:$0xff] %v499_v60  ;;  %v448_v0 = vadd.f32 %v447_v42, %v359_v61  ;;  %v602_v1 = vadd.f32 %v601_v63, %v600_v59  ;;  %v667_v26 = vpop.f32.mrf.mxu1 }
  0xee   :  { %v603_v3 = vpop.f32.mrf.mxu0 }
  0xef   :  { %v500_v4 = vmax.f32 %v448_v0, 0.0  ;;  %v364_v5 = vadd.f32 %v602_v1, %v890_v48  ;;  %v479_v30 = vpop.f32.mrf.mxu1 }
  0xf0   :  { %v604_v7 = vpop.f32.mrf.mxu0 }
  0xf1   :  { %514 = vst [vmem:[%s951_s3 + $0x8] sm:$0xff] %v500_v4  ;;  %v453_v8 = vadd.f32 %v452_v44, %v364_v5  ;;  %v605_v9 = vadd.f32 %v604_v7, %v603_v3  ;;  %v668_v34 = vpop.f32.mrf.mxu1 }
  0xf2   :  { %v606_v11 = vpop.f32.mrf.mxu0 }
  0xf3   :  { %v501_v12 = vmax.f32 %v453_v8, 0.0  ;;  %v367_v13 = vadd.f32 %v605_v9, %v890_v48  ;;  %v484_v38 = vpop.f32.mrf.mxu1 }
  0xf4   :  { %v607_v15 = vpop.f32.mrf.mxu0 }
  0xf5   :  { %515 = vst [vmem:[%s951_s3 + $0x10] sm:$0xff] %v501_v12  ;;  %v456_v16 = vadd.f32 %v455_v47, %v367_v13  ;;  %v608_v17 = vadd.f32 %v607_v15, %v606_v11  ;;  %v671_v42 = vpop.f32.mrf.mxu1 }
  0xf6   :  { %v609_v19 = vpop.f32.mrf.mxu0 }
  0xf7   :  { %v502_v20 = vmax.f32 %v456_v16, 0.0  ;;  %v372_v21 = vadd.f32 %v608_v17, %v890_v48  ;;  %v487_v46 = vpop.f32.mrf.mxu1 }
  0xf8   :  { %v610_v23 = vpop.f32.mrf.mxu0 }
  0xf9   :  { %516 = vst [vmem:[%s951_s3 + $0x18] sm:$0xff] %v502_v20  ;;  %v461_v24 = vadd.f32 %v460_v54, %v372_v21  ;;  %v611_v25 = vadd.f32 %v610_v23, %v609_v19  ;;  %v672_v51 = vpop.f32.mrf.mxu1 }
  0xfa   :  { %v612_v27 = vpop.f32.mrf.mxu0 }
  0xfb   :  { %v503_v28 = vmax.f32 %v461_v24, 0.0  ;;  %v375_v29 = vadd.f32 %v611_v25, %v890_v48  ;;  %v492_v55 = vpop.f32.mrf.mxu1 }
  0xfc   :  { %v613_v31 = vpop.f32.mrf.mxu0 }
  0xfd   :  { %517 = vst [vmem:[%s951_s3 + $0x20] sm:$0xff] %v503_v28  ;;  %v464_v32 = vadd.f32 %v463_v62, %v375_v29  ;;  %v614_v33 = vadd.f32 %v613_v31, %v612_v27  ;;  %v675_v59 = vpop.f32.mrf.mxu1 }
  0xfe   :  { %v615_v35 = vpop.f32.mrf.mxu0 }
  0xff   :  { %v504_v36 = vmax.f32 %v464_v32, 0.0  ;;  %v380_v37 = vadd.f32 %v614_v33, %v890_v48  ;;  %v495_v63 = vpop.f32.mrf.mxu1 }
 0x100   :  { %v616_v39 = vpop.f32.mrf.mxu0 }
 0x101   :  { %518 = vst [vmem:[%s951_s3 + $0x28] sm:$0xff] %v504_v36  ;;  %v469_v40 = vadd.f32 %v468_v6, %v380_v37  ;;  %v617_v41 = vadd.f32 %v616_v39, %v615_v35  ;;  %v676_v3 = vpop.f32.mrf.mxu1 }
 0x102   :  { %v618_v43 = vpop.f32.mrf.mxu0 }
 0x103   :  { %v505_v44 = vmax.f32 %v469_v40, 0.0  ;;  %v383_v45 = vadd.f32 %v617_v41, %v890_v48 }
 0x104   :  { %v619_v47 = vpop.f32.mrf.mxu0 }
 0x105   :  { %519 = vst [vmem:[%s951_s3 + $0x30] sm:$0xff] %v505_v44  ;;  %v472_v49 = vadd.f32 %v471_v14, %v383_v45  ;;  %v620_v50 = vadd.f32 %v619_v47, %v618_v43 }
 0x106   :  { %v621_v52 = vpop.f32.mrf.mxu0 }
 0x107   :  { %v506_v53 = vmax.f32 %v472_v49, 0.0  ;;  %v388_v54 = vadd.f32 %v620_v50, %v890_v48 }
 0x108   :  { %v622_v56 = vpop.f32.mrf.mxu0 }
 0x109   :  { %520 = vst [vmem:[%s951_s3 + $0x38] sm:$0xff] %v506_v53  ;;  %v477_v57 = vadd.f32 %v476_v22, %v388_v54  ;;  %v623_v58 = vadd.f32 %v622_v56, %v621_v52 }
 0x10a   :  { %v624_v60 = vpop.f32.mrf.mxu0 }
 0x10b   :  { %v507_v61 = vmax.f32 %v477_v57, 0.0  ;;  %v391_v62 = vadd.f32 %v623_v58, %v890_v48 }
 0x10c   :  { %v625_v0 = vpop.f32.mrf.mxu0 }
 0x10d   :  { %521 = vst [vmem:[%s951_s3 + $0x40] sm:$0xff] %v507_v61  ;;  %v480_v1 = vadd.f32 %v479_v30, %v391_v62  ;;  %v626_v2 = vadd.f32 %v625_v0, %v624_v60 }
 0x10e   :  { %v627_v4 = vpop.f32.mrf.mxu0 }
 0x10f   :  { %v508_v5 = vmax.f32 %v480_v1, 0.0  ;;  %v396_v6 = vadd.f32 %v626_v2, %v890_v48 }
 0x110   :  { %v628_v7 = vpop.f32.mrf.mxu0 }
 0x111   :  { %522 = vst [vmem:[%s951_s3 + $0x48] sm:$0xff] %v508_v5  ;;  %v485_v8 = vadd.f32 %v484_v38, %v396_v6  ;;  %v629_v9 = vadd.f32 %v628_v7, %v627_v4 }
 0x112   :  { %v630_v10 = vpop.f32.mrf.mxu0 }
 0x113   :  { %v509_v11 = vmax.f32 %v485_v8, 0.0  ;;  %v399_v12 = vadd.f32 %v629_v9, %v890_v48 }
 0x114   :  { %v631_v13 = vpop.f32.mrf.mxu0 }
 0x115   :  { %523 = vst [vmem:[%s951_s3 + $0x50] sm:$0xff] %v509_v11  ;;  %v488_v14 = vadd.f32 %v487_v46, %v399_v12  ;;  %v632_v15 = vadd.f32 %v631_v13, %v630_v10 }
 0x116   :  { %v633_v16 = vpop.f32.mrf.mxu0 }
 0x117   :  { %v510_v17 = vmax.f32 %v488_v14, 0.0  ;;  %v404_v18 = vadd.f32 %v632_v15, %v890_v48 }
 0x118   :  { %v634_v19 = vpop.f32.mrf.mxu0 }
 0x119   :  { %524 = vst [vmem:[%s951_s3 + $0x58] sm:$0xff] %v510_v17  ;;  %v493_v20 = vadd.f32 %v492_v55, %v404_v18  ;;  %v635_v21 = vadd.f32 %v634_v19, %v633_v16 }
 0x11b   :  { %v511_v22 = vmax.f32 %v493_v20, 0.0  ;;  %v407_v23 = vadd.f32 %v635_v21, %v890_v48 }
 0x11d   :  { %525 = vst [vmem:[%s951_s3 + $0x60] sm:$0xff] %v511_v22  ;;  %v496_v24 = vadd.f32 %v495_v63, %v407_v23 }
 0x11f   :  { %v512_v25 = vmax.f32 %v496_v24, 0.0 }
 0x121   :  { %526 = vst [vmem:[%s951_s3 + $0x68] sm:$0xff] %v512_v25 }

// kernel: _lambda_.8
= control target key start
LH: loop header
LB: loop body
LE: loop exit
PB: predicated region body
PF: predicated region fallthrough
CT: control target
= control target key end

     0   :  { %s1937_s12 = smov 0   ;;  %s1939_s13 = smov 0   ;;  %s2185_s0 = inlined_call_operand.vmem [shape: bf16[512,288], index: 0, kind: input, shape index: {}]   ;;  %s2186_s1 = inlined_call_operand.vmem [shape: bf16[288,128], index: 1, kind: input, shape index: {}]   ;;  %s2187_s2 = inlined_call_operand.vmem [shape: f32[1,128], index: 2, kind: input, shape index: {}]   ;;  %s2188_s3 = inlined_call_operand.vmem [shape: bf16[512,128], index: 3, kind: output, shape index: {}]  }
   0x1   :  { %s1941_s14 = smov 0  }
   0x2 LB: > { %s25_s15 = sadd.s32 1, %s1911_s13  ;;  %p1355_p0 = scmp.ge.s32.totalorder %s1915_s14, 1  ;;  %s1915_s14 = sphi %s1941_s14, %s13_s14   ;;  %s1911_s13 = sphi %s1939_s13, %s2190_s13   ;;  %s1907_s12 = sphi %s1937_s12, %s2189_s12  }
   0x3   : > { %p27_p1 = scmp.ge.s32.totalorder %s25_s15, 2  ;;  %p170_p2 = scmp.lt.s32.totalorder %s1915_s14, 3 }
   0x5   : > { %s2192_s15 = smov (%p27_p1, %s25_s15), 0  ;;  %p171_p3 = pnand %p1355_p0, %p170_p2 }
   0x6   : > { %s1356_s18 = sshll.u32 (!%p171_p3), %s1907_s12, 5 }
   0x7   : > { %174 = sbr.rel (%p171_p3) target bundleno = 343 (0x157), region = 32  ;;  %p206_p4 = scmp.lt.s32.totalorder (!%p171_p3), %s1356_s18, 63 }
   0xc   : > { %v1811_v0 = vld [vmem:[%s2186_s1 + $0x78] sm:$0xff]   ;;  %v1813_v2 = vld [vmem:[%s2186_s1 + $0x70] sm:$0xff]   ;;  %v1815_v4 = vld [vmem:[%s2186_s1 + $0x68] sm:$0xff]   ;;  %s2194_s18 = smov (!%p206_p4, %s1356_s18), 63  ;;  %vm684_vm0 = vcmask 261120  }
   0xd   : > { %v1812_v1 = vld [vmem:[%s2186_s1 + $0x38] sm:$0xff]   ;;  %1604 = vmatprep.subr.bf16.mxu0 %v1811_v0  ;;  %1770 = vmatprep.subr.bf16.mxu1 %v1811_v0  ;;  %v1814_v3 = vld [vmem:[%s2186_s1 + $0x30] sm:$0xff]   ;;  %v1816_v5 = vld [vmem:[%s2186_s1 + $0x28] sm:$0xff]   ;;  %s1786_s4 = smul.u32 12, %s2194_s18  ;;  %s1359_s9 = sshll.u32 %s2194_s18, 2 }
   0xe   : > { %1605 = vmatpush3.bf16.msra.mxu0 %v1812_v1  ;;  %1778 = vmatpush3.bf16.msra.mxu1 %v1812_v1  ;;  %v1817_v6 = vld [vmem:[%s2186_s1 + $0x60] sm:$0xff]   ;;  %v1819_v8 = vld [vmem:[%s2186_s1 + $0x58] sm:$0xff]   ;;  %v1821_v10 = vld [vmem:[%s2186_s1 + $0x50] sm:$0xff]   ;;  %s2114_s12 = scalar_lea.vmem %s2188_s3, %s1359_s9 }
   0xf   : > { %1606 = vmatprep.subr.bf16.mxu0 %v1813_v2  ;;  %1771 = vmatprep.subr.bf16.mxu1 %v1813_v2  ;;  %v1818_v7 = vld [vmem:[%s2186_s1 + $0x20] sm:$0xff]   ;;  %s1988_s11 = scalar_lea.vmem %s2185_s0, %s1786_s4  ;;  %v1820_v9 = vld [vmem:[%s2186_s1 + $0x18] sm:$0xff]   ;;  %v1822_v13 = vld [vmem:[%s2186_s1 + $0x10] sm:$0xff]  }
  0x10   : > { %v1829_v11 = vld [vmem:[%s1988_s11 + $0x4] ss:$12 sps:$4 sm:$0xff]   ;;  %v1823_v14 = vld [vmem:[%s2186_s1 + $0x48] sm:$0xff]   ;;  %v1840_v26 = vld [vmem:[%s1988_s11 + $0x34] ss:$12 sps:$4 sm:$0xff]  }
  0x11   : > { %v1832_v12 = vld [vmem:[%s1988_s11 + $0x124] ss:$12 sps:$4 sm:$0xff]   ;;  %765 = vmatprep.mubr.bf16.mxu0 %v1829_v11  ;;  %v1824_v15 = vld [vmem:[%s2186_s1 + $0x8] sm:$0xff]   ;;  %v1842_v27 = vld [vmem:[%s1988_s11 + $0x154] ss:$12 sps:$4 sm:$0xff]  }
  0x12   : > { %1607 = vmatpush3.bf16.msra.mxu0 %v1814_v3  ;;  %1779 = vmatpush3.bf16.msra.mxu1 %v1814_v3  ;;  %v1825_v16 = vld [vmem:[%s2186_s1 + $0x40] sm:$0xff]   ;;  %v1833_v18 = vld [vmem:[%s2186_s1 + $0x88] sm:$0xff]   ;;  %v1844_v28 = vld [vmem:[%s1988_s11 + $0x30] ss:$12 sps:$4 sm:$0xff]  }
  0x13   : > { %1608 = vmatprep.subr.bf16.mxu0 %v1815_v4  ;;  %1772 = vmatprep.subr.bf16.mxu1 %v1815_v4  ;;  %v1826_v17 = vld [vmem:[%s2186_s1] sm:$0xff]   ;;  %v1834_v21 = vld [vmem:[%s1988_s11 + $0x1c] ss:$12 sps:$4 sm:$0xff]   ;;  %v1847_v30 = vld [vmem:[%s1988_s11 + $0x4c] ss:$12 sps:$4 sm:$0xff]  }
  0x14   : > { %861 = vmatprep.mubr.bf16.mxu1 %v1832_v12  ;;  %v1827_v19 = vld [vmem:[%s1988_s11] ss:$12 sps:$4 sm:$0xff]   ;;  %v1836_v22 = vld [vmem:[%s1988_s11 + $0x13c] ss:$12 sps:$4 sm:$0xff]   ;;  %v1838_v24 = vld [vmem:[%s1988_s11 + $0x18] ss:$12 sps:$4 sm:$0xff]  }
  0x15   : > { %v1830_v20 = vld [vmem:[%s1988_s11 + $0x120] ss:$12 sps:$4 sm:$0xff]   ;;  %v1839_v25 = vld [vmem:[%s1988_s11 + $0x138] ss:$12 sps:$4 sm:$0xff]   ;;  %v1845_v29 = vld [vmem:[%s1988_s11 + $0x150] ss:$12 sps:$4 sm:$0xff]  }
  0x16   : > { %1609 = vmatpush3.bf16.msra.mxu0 %v1816_v5  ;;  %1780 = vmatpush3.bf16.msra.mxu1 %v1816_v5  ;;  %v1846_v23 = vld [vmem:[%s2186_s1 + $0x80] sm:$0xff]   ;;  %v1849_v31 = vld [vmem:[%s1988_s11 + $0x16c] ss:$12 sps:$4 sm:$0xff]   ;;  %v1851_v32 = vld [vmem:[%s1988_s11 + $0x48] ss:$12 sps:$4 sm:$0xff]  }
  0x17   : > { %1610 = vmatprep.subr.bf16.mxu0 %v1817_v6  ;;  %1773 = vmatprep.subr.bf16.mxu1 %v1817_v6  ;;  %v1852_v33 = vld [vmem:[%s1988_s11 + $0x168] ss:$12 sps:$4 sm:$0xff]   ;;  %v1853_v34 = vld [vmem:[%s1988_s11 + $0x64] ss:$12 sps:$4 sm:$0xff]   ;;  %v1856_v36 = vld [vmem:[%s1988_s11 + $0x60] ss:$12 sps:$4 sm:$0xff]  }
  0x18   : > { %v1855_v35 = vld [vmem:[%s1988_s11 + $0x8] ss:$12 sps:$4 sm:$0xff]   ;;  %v1857_v37 = vld [vmem:[%s1988_s11 + $0x20] ss:$12 sps:$4 sm:$0xff]   ;;  %v1860_v39 = vld [vmem:[%s1988_s11 + $0x38] ss:$12 sps:$4 sm:$0xff]  }
  0x19   : > { %v1858_v38 = vld [vmem:[%s1988_s11 + $0x7c] ss:$12 sps:$4 sm:$0xff]   ;;  %v1861_v40 = vld [vmem:[%s1988_s11 + $0x78] ss:$12 sps:$4 sm:$0xff]   ;;  %v1863_v42 = vld [vmem:[%s1988_s11 + $0x94] ss:$12 sps:$4 sm:$0xff]  }
  0x1a   : > { %1611 = vmatpush3.bf16.msra.mxu0 %v1818_v7  ;;  %1781 = vmatpush3.bf16.msra.mxu1 %v1818_v7  ;;  %v1862_v41 = vld [vmem:[%s1988_s11 + $0x50] ss:$12 sps:$4 sm:$0xff]   ;;  %v1865_v43 = vld [vmem:[%s1988_s11 + $0x68] ss:$12 sps:$4 sm:$0xff]   ;;  %v1867_v45 = vld [vmem:[%s1988_s11 + $0x80] ss:$12 sps:$4 sm:$0xff]  }
  0x1b   : > { %1612 = vmatprep.subr.bf16.mxu0 %v1819_v8  ;;  %1774 = vmatprep.subr.bf16.mxu1 %v1819_v8  ;;  %v1866_v44 = vld [vmem:[%s1988_s11 + $0x90] ss:$12 sps:$4 sm:$0xff]   ;;  %v1868_v46 = vld [vmem:[%s1988_s11 + $0xac] ss:$12 sps:$4 sm:$0xff]   ;;  %v1871_v48 = vld [vmem:[%s1988_s11 + $0xa8] ss:$12 sps:$4 sm:$0xff]  }
  0x1c   : > { %v1870_v47 = vld [vmem:[%s1988_s11 + $0x98] ss:$12 sps:$4 sm:$0xff]   ;;  %v1872_v49 = vld [vmem:[%s1988_s11 + $0xb0] ss:$12 sps:$4 sm:$0xff]   ;;  %v1875_v51 = vld [vmem:[%s1988_s11 + $0xc8] ss:$12 sps:$4 sm:$0xff]  }
  0x1d   : > { %v1873_v50 = vld [vmem:[%s1988_s11 + $0xc4] ss:$12 sps:$4 sm:$0xff]   ;;  %v1876_v52 = vld [vmem:[%s1988_s11 + $0xc0] ss:$12 sps:$4 sm:$0xff]   ;;  %v1878_v54 = vld [vmem:[%s1988_s11 + $0xdc] ss:$12 sps:$4 sm:$0xff]  }
  0x1e   : > { %1613 = vmatpush3.bf16.msra.mxu0 %v1820_v9  ;;  %1782 = vmatpush3.bf16.msra.mxu1 %v1820_v9  ;;  %v1877_v53 = vld [vmem:[%s1988_s11 + $0xe0] ss:$12 sps:$4 sm:$0xff]   ;;  %v1880_v55 = vld [vmem:[%s1988_s11 + $0xf8] ss:$12 sps:$4 sm:$0xff]   ;;  %v1882_v57 = vld [vmem:[%s1988_s11 + $0x110] ss:$12 sps:$4 sm:$0xff]  }
  0x1f   : > { %1614 = vmatprep.subr.bf16.mxu0 %v1821_v10  ;;  %1775 = vmatprep.subr.bf16.mxu1 %v1821_v10  ;;  %v1881_v56 = vld [vmem:[%s1988_s11 + $0xd8] ss:$12 sps:$4 sm:$0xff]   ;;  %v1883_v58 = vld [vmem:[%s1988_s11 + $0xf4] ss:$12 sps:$4 sm:$0xff]   ;;  %v1886_v60 = vld [vmem:[%s1988_s11 + $0xf0] ss:$12 sps:$4 sm:$0xff]  }
  0x20   : > { %v1885_v59 = vld [vmem:[%s1988_s11 + $0x128] ss:$12 sps:$4 sm:$0xff]   ;;  %v1887_v61 = vld [vmem:[%s1988_s11 + $0x140] ss:$12 sps:$4 sm:$0xff]   ;;  %v1890_v63 = vld [vmem:[%s1988_s11 + $0x158] ss:$12 sps:$4 sm:$0xff]  }
  0x21   : > { %v1888_v62 = vld [vmem:[%s1988_s11 + $0x10c] ss:$12 sps:$4 sm:$0xff]   ;;  %v1891_v0 = vld [vmem:[%s1988_s11 + $0x108] ss:$12 sps:$4 sm:$0xff]   ;;  %v1892_v1 = vld [vmem:[%s1988_s11 + $0x170] ss:$12 sps:$4 sm:$0xff]  }
  0x22   : > { %1615 = vmatpush3.bf16.msra.mxu0 %v1822_v13  ;;  %1783 = vmatpush3.bf16.msra.mxu1 %v1822_v13 }
  0x23   : > { %1616 = vmatprep.subr.bf16.mxu0 %v1823_v14  ;;  %1776 = vmatprep.subr.bf16.mxu1 %v1823_v14 }
  0x26   : > { %1617 = vmatpush3.bf16.msra.mxu0 %v1824_v15  ;;  %1784 = vmatpush3.bf16.msra.mxu1 %v1824_v15 }
  0x27   : > { %1618 = vmatprep.subr.bf16.mxu0 %v1825_v16  ;;  %1777 = vmatprep.subr.bf16.mxu1 %v1825_v16 }
  0x2a   : > { %1619 = vmatpush3.bf16.msra.mxu0 %v1826_v17  ;;  %1785 = vmatpush3.bf16.msra.mxu1 %v1826_v17 }
  0x2b   : > { %1734 = vmatprep.subr.bf16.mxu1 %v1833_v18 }
  0x2d   : > { %766 = vmatmul.mubr.bf16.vlgmr.msra.gmra.mxu0 %v1827_v19  ;;  %862 = vmatmul.mubr.bf16.vlgmr.msra.gmra.mxu1 %v1830_v20 }
  0x2e   : > { %1735 = vmatpush3.bf16.msra.mxu1 %v1833_v18  ;;  %773 = vmatprep.mubr.bf16.mxu0 %v1834_v21 }
  0x2f   : > { %869 = vmatprep.mubr.bf16.mxu1 %v1836_v22  ;;  %1736 = vmatprep.subr.bf16.mxu1 %v1846_v23 }
  0x32   : > { %1737 = vmatpush3.bf16.msra.mxu1 %v1846_v23 }
  0x35   : > { %774 = vmatmul.mubr.bf16.gmra.mxu0 %v1838_v24  ;;  %870 = vmatmul.mubr.bf16.gmra.mxu1 %v1839_v25 }
  0x36   : > { %781 = vmatprep.mubr.bf16.mxu0 %v1840_v26  ;;  %877 = vmatprep.mubr.bf16.mxu1 %v1842_v27 }
  0x3d   : > { %782 = vmatmul.mubr.bf16.gmra.mxu0 %v1844_v28  ;;  %878 = vmatmul.mubr.bf16.gmra.mxu1 %v1845_v29 }
  0x3e   : > { %789 = vmatprep.mubr.bf16.mxu0 %v1847_v30  ;;  %885 = vmatprep.mubr.bf16.mxu1 %v1849_v31 }
  0x45   : > { %790 = vmatmul.mubr.bf16.gmra.mxu0 %v1851_v32  ;;  %886 = vmatmul.mubr.bf16.gmra.mxu1 %v1852_v33 }
  0x46   : > { %797 = vmatprep.mubr.bf16.mxu0 %v1853_v34  ;;  %1738 = vmatprep.mubr.msk.bf16.mxu1 %vm684_vm0, %v1855_v35 }
  0x4d   : > { %798 = vmatmul.mubr.bf16.gmra.mxu0 %v1856_v36  ;;  %1739 = vmatmul.mubr.msk.bf16.vlgmr.msra.gmra.mxu1 %vm684_vm0, %v1857_v37 }
  0x4e   : > { %805 = vmatprep.mubr.bf16.mxu0 %v1858_v38  ;;  %1742 = vmatprep.mubr.msk.bf16.mxu1 %vm684_vm0, %v1860_v39 }
  0x55   : > { %806 = vmatmul.mubr.bf16.gmra.mxu0 %v1861_v40  ;;  %1743 = vmatmul.mubr.msk.bf16.gmra.mxu1 %vm684_vm0, %v1862_v41 }
  0x56   : > { %813 = vmatprep.mubr.bf16.mxu0 %v1863_v42  ;;  %1746 = vmatprep.mubr.msk.bf16.mxu1 %vm684_vm0, %v1865_v43 }
  0x5d   : > { %814 = vmatmul.mubr.bf16.gmra.mxu0 %v1866_v44  ;;  %1747 = vmatmul.mubr.msk.bf16.gmra.mxu1 %vm684_vm0, %v1867_v45  ;;  %v2104_v44 = vld [vmem:[%s2187_s2] ss:$0 sm:$0xff] }
  0x5e   : > { %821 = vmatprep.mubr.bf16.mxu0 %v1868_v46  ;;  %1750 = vmatprep.mubr.msk.bf16.mxu1 %vm684_vm0, %v1870_v47 }
  0x65   : > { %822 = vmatmul.mubr.bf16.gmra.mxu0 %v1871_v48  ;;  %1751 = vmatmul.mubr.msk.bf16.gmra.mxu1 %vm684_vm0, %v1872_v49 }
  0x66   : > { %829 = vmatprep.mubr.bf16.mxu0 %v1873_v50  ;;  %1754 = vmatprep.mubr.msk.bf16.mxu1 %vm684_vm0, %v1875_v51 }
  0x6d   : > { %830 = vmatmul.mubr.bf16.gmra.mxu0 %v1876_v52  ;;  %1755 = vmatmul.mubr.msk.bf16.gmra.mxu1 %vm684_vm0, %v1877_v53 }
  0x6e   : > { %837 = vmatprep.mubr.bf16.mxu0 %v1878_v54  ;;  %1758 = vmatprep.mubr.msk.bf16.mxu1 %vm684_vm0, %v1880_v55 }
  0x75   : > { %838 = vmatmul.mubr.bf16.gmra.mxu0 %v1881_v56  ;;  %1759 = vmatmul.mubr.msk.bf16.gmra.mxu1 %vm684_vm0, %v1882_v57 }
  0x76   : > { %845 = vmatprep.mubr.bf16.mxu0 %v1883_v58  ;;  %1762 = vmatprep.mubr.msk.bf16.mxu1 %vm684_vm0, %v1885_v59 }
  0x7d   : > { %846 = vmatmul.mubr.bf16.gmra.mxu0 %v1886_v60  ;;  %1763 = vmatmul.mubr.msk.bf16.gmra.mxu1 %vm684_vm0, %v1887_v61 }
  0x7e   : > { %853 = vmatprep.mubr.bf16.mxu0 %v1888_v62  ;;  %1766 = vmatprep.mubr.msk.bf16.mxu1 %vm684_vm0, %v1890_v63 }
  0x85   : > { %854 = vmatmul.mubr.bf16.gmra.mxu0 %v1891_v0  ;;  %1767 = vmatmul.mubr.msk.bf16.gmra.mxu1 %vm684_vm0, %v1892_v1 }
  0xed   : > { %v1620_v2 = vpop.f32.mrf.mxu0  ;;  %v1692_v3 = vpop.f32.mrf.mxu1 }
  0xef   : > { %v1621_v4 = vpop.f32.mrf.mxu0  ;;  %v1693_v5 = vpop.f32.mrf.mxu1 }
  0xf0   : > { %v2081_v6 = vadd.f32 %v1693_v5, %v1692_v3  ;;  %v1622_v41 = vadd.f32 %v1621_v4, %v1620_v2 }
  0xf1   : > { %v1623_v7 = vpop.f32.mrf.mxu0  ;;  %v1695_v8 = vpop.f32.mrf.mxu1 }
  0xf2   : > { %v768_v51 = vadd.f32 %v1622_v41, %v2104_v44 }
  0xf3   : > { %v1624_v9 = vpop.f32.mrf.mxu0  ;;  %v1696_v10 = vpop.f32.mrf.mxu1 }
  0xf4   : > { %v2083_v11 = vadd.f32 %v1696_v10, %v1695_v8  ;;  %v1625_v46 = vadd.f32 %v1624_v9, %v1623_v7 }
  0xf5   : > { %v1626_v12 = vpop.f32.mrf.mxu0  ;;  %v1698_v13 = vpop.f32.mrf.mxu1 }
  0xf6   : > { %v771_v58 = vadd.f32 %v1625_v46, %v2104_v44 }
  0xf7   : > { %v1627_v14 = vpop.f32.mrf.mxu0  ;;  %v1699_v15 = vpop.f32.mrf.mxu1 }
  0xf8   : > { %v2085_v16 = vadd.f32 %v1699_v15, %v1698_v13  ;;  %v1628_v38 = vadd.f32 %v1627_v14, %v1626_v12 }
  0xf9   : > { %v1629_v17 = vpop.f32.mrf.mxu0  ;;  %v1701_v18 = vpop.f32.mrf.mxu1 }
  0xfa   : > { %v776_v47 = vadd.f32 %v1628_v38, %v2104_v44 }
  0xfb   : > { %v1630_v19 = vpop.f32.mrf.mxu0  ;;  %v1702_v20 = vpop.f32.mrf.mxu1 }
  0xfc   : > { %v2087_v21 = vadd.f32 %v1702_v20, %v1701_v18  ;;  %v1631_v42 = vadd.f32 %v1630_v19, %v1629_v17 }
  0xfd   : > { %v1632_v22 = vpop.f32.mrf.mxu0  ;;  %v1704_v23 = vpop.f32.mrf.mxu1 }
  0xfe   : > { %v779_v52 = vadd.f32 %v1631_v42, %v2104_v44 }
  0xff   : > { %v1633_v24 = vpop.f32.mrf.mxu0  ;;  %v1705_v25 = vpop.f32.mrf.mxu1 }
 0x100   : > { %v2089_v26 = vadd.f32 %v1705_v25, %v1704_v23  ;;  %v1634_v59 = vadd.f32 %v1633_v24, %v1632_v22 }
 0x101   : > { %v1635_v27 = vpop.f32.mrf.mxu0  ;;  %v1707_v28 = vpop.f32.mrf.mxu1 }
 0x102   : > { %v784_v15 = vadd.f32 %v1634_v59, %v2104_v44 }
 0x103   : > { %v1636_v29 = vpop.f32.mrf.mxu0  ;;  %v1708_v30 = vpop.f32.mrf.mxu1 }
 0x104   : > { %v2091_v31 = vadd.f32 %v1708_v30, %v1707_v28  ;;  %v1637_v2 = vadd.f32 %v1636_v29, %v1635_v27 }
 0x105   : > { %v1638_v32 = vpop.f32.mrf.mxu0  ;;  %v2093_v33 = vpop.f32.mrf.mxu1 }
 0x106   : > { %v787_v24 = vadd.f32 %v1637_v2, %v2104_v44 }
 0x107   : > { %v1639_v34 = vpop.f32.mrf.mxu0  ;;  %v2095_v35 = vpop.f32.mrf.mxu1 }
 0x108   : > { %v1640_v55 = vadd.f32 %v1639_v34, %v1638_v32 }
 0x109   : > { %v1641_v36 = vpop.f32.mrf.mxu0  ;;  %v2097_v37 = vpop.f32.mrf.mxu1 }
 0x10a   : > { %v792_v9 = vadd.f32 %v1640_v55, %v2104_v44 }
 0x10b   : > { %v1642_v39 = vpop.f32.mrf.mxu0  ;;  %v2099_v40 = vpop.f32.mrf.mxu1 }
 0x10c   : > { %v1643_v62 = vadd.f32 %v1642_v39, %v1641_v36 }
 0x10d   : > { %v1644_v43 = vpop.f32.mrf.mxu0  ;;  %v1740_v45 = vpop.f32.mrf.mxu1 }
 0x10e   : > { %v937_v50 = vadd.f32 %v1740_v45, %v776_v47  ;;  %v795_v17 = vadd.f32 %v1643_v62, %v2104_v44 }
 0x10f   : > { %v1645_v48 = vpop.f32.mrf.mxu0  ;;  %v928_v49 = vpop.f32.mrf.mxu1 }
 0x110   : > { %v929_v56 = vadd.f32 %v928_v49, %v768_v51  ;;  %v1057_v63 = vmax.f32 %v937_v50, 0.0  ;;  %v1646_v25 = vadd.f32 %v1645_v48, %v1644_v43 }
 0x111   : > { %v1647_v53 = vpop.f32.mrf.mxu0  ;;  %v1741_v54 = vpop.f32.mrf.mxu1 }
 0x112   : > { %v940_v57 = vadd.f32 %v1741_v54, %v779_v52  ;;  %v1055_v5 = vmax.f32 %v929_v56, 0.0  ;;  %v800_v50 = vadd.f32 %v1646_v25, %v2104_v44 }
 0x113   : > { %v1648_v60 = vpop.f32.mrf.mxu0  ;;  %v931_v61 = vpop.f32.mrf.mxu1 }
 0x114   : > { %v1058_v0 = vmax.f32 %v940_v57, 0.0  ;;  %v932_v1 = vadd.f32 %v931_v61, %v771_v58  ;;  %v1649_v36 = vadd.f32 %v1648_v60, %v1647_v53 }
 0x115   : > { %v1650_v3 = vpop.f32.mrf.mxu0  ;;  %v1744_v4 = vpop.f32.mrf.mxu1 }
 0x116   : > { %v1517_v7 = vpack.c.bf16 %v1058_v0, %v1057_v63  ;;  %v1056_v8 = vmax.f32 %v932_v1, 0.0  ;;  %v953_v14 = vadd.f32 %v1744_v4, %v792_v9  ;;  %v803_v56 = vadd.f32 %v1649_v36, %v2104_v44 }
 0x117   : > { %v1651_v10 = vpop.f32.mrf.mxu0  ;;  %v944_v12 = vpop.f32.mrf.mxu1 }
 0x118   : > { %1589 = vst [vmem:[%s2114_s12 + $0x8] sm:$0xff] %v1517_v7   ;;  %v1512_v13 = vpack.c.bf16 %v1056_v8, %v1055_v5  ;;  %v1652_v20 = vadd.f32 %v1651_v10, %v1650_v3  ;;  %v945_v22 = vadd.f32 %v944_v12, %v784_v15  ;;  %v1061_v29 = vmax.f32 %v953_v14, 0.0 }
 0x119   : > { %v1653_v18 = vpop.f32.mrf.mxu0  ;;  %v1745_v19 = vpop.f32.mrf.mxu1 }
 0x11a   : > { %1513 = vst [vmem:[%s2114_s12] sm:$0xff] %v1512_v13   ;;  %v956_v23 = vadd.f32 %v1745_v19, %v795_v17  ;;  %v1059_v41 = vmax.f32 %v945_v22, 0.0  ;;  %v808_v46 = vadd.f32 %v1652_v20, %v2104_v44 }
 0x11b   : > { %v1654_v27 = vpop.f32.mrf.mxu0  ;;  %v947_v28 = vpop.f32.mrf.mxu1 }
 0x11c   : > { %v1062_v30 = vmax.f32 %v956_v23, 0.0  ;;  %v1655_v32 = vadd.f32 %v1654_v27, %v1653_v18  ;;  %v948_v34 = vadd.f32 %v947_v28, %v787_v24 }
 0x11d   : > { %v1656_v38 = vpop.f32.mrf.mxu0  ;;  %v1748_v39 = vpop.f32.mrf.mxu1 }
 0x11e   : > { %v1527_v42 = vpack.c.bf16 %v1062_v30, %v1061_v29  ;;  %v1060_v45 = vmax.f32 %v948_v34, 0.0  ;;  %v969_v48 = vadd.f32 %v1748_v39, %v808_v46  ;;  %v811_v51 = vadd.f32 %v1655_v32, %v2104_v44 }
 0x11f   : > { %v1657_v47 = vpop.f32.mrf.mxu0  ;;  %v960_v49 = vpop.f32.mrf.mxu1 }
 0x120   : > { %1591 = vst [vmem:[%s2114_s12 + $0x18] sm:$0xff] %v1527_v42   ;;  %v1522_v43 = vpack.c.bf16 %v1060_v45, %v1059_v41  ;;  %v961_v53 = vadd.f32 %v960_v49, %v800_v50  ;;  %v1065_v59 = vmax.f32 %v969_v48, 0.0  ;;  %v1658_v60 = vadd.f32 %v1657_v47, %v1656_v38 }
 0x121   : > { %v1659_v52 = vpop.f32.mrf.mxu0  ;;  %v1749_v54 = vpop.f32.mrf.mxu1 }
 0x122   : > { %1590 = vst [vmem:[%s2114_s12 + $0x10] sm:$0xff] %v1522_v43   ;;  %v972_v55 = vadd.f32 %v1749_v54, %v811_v51  ;;  %v1063_v1 = vmax.f32 %v961_v53, 0.0  ;;  %v816_v10 = vadd.f32 %v1658_v60, %v2104_v44 }
 0x123   : > { %v1660_v57 = vpop.f32.mrf.mxu0  ;;  %v963_v58 = vpop.f32.mrf.mxu1 }
 0x124   : > { %v1066_v61 = vmax.f32 %v972_v55, 0.0  ;;  %v964_v62 = vadd.f32 %v963_v58, %v803_v56  ;;  %v1661_v3 = vadd.f32 %v1660_v57, %v1659_v52 }
 0x125   : > { %v1662_v63 = vpop.f32.mrf.mxu0  ;;  %v1752_v0 = vpop.f32.mrf.mxu1 }
 0x126   : > { %v1537_v2 = vpack.c.bf16 %v1066_v61, %v1065_v59  ;;  %v1064_v4 = vmax.f32 %v964_v62, 0.0  ;;  %v819_v17 = vadd.f32 %v1661_v3, %v2104_v44 }
 0x127   : > { %v1663_v5 = vpop.f32.mrf.mxu0  ;;  %v976_v7 = vpop.f32.mrf.mxu1 }
 0x128   : > { %1593 = vst [vmem:[%s2114_s12 + $0x28] sm:$0xff] %v1537_v2   ;;  %v1532_v8 = vpack.c.bf16 %v1064_v4, %v1063_v1  ;;  %v1664_v9 = vadd.f32 %v1663_v5, %v1662_v63  ;;  %v977_v15 = vadd.f32 %v976_v7, %v816_v10 }
 0x129   : > { %v1665_v12 = vpop.f32.mrf.mxu0  ;;  %v1753_v13 = vpop.f32.mrf.mxu1 }
 0x12a   : > { %1592 = vst [vmem:[%s2114_s12 + $0x20] sm:$0xff] %v1532_v8   ;;  %v824_v14 = vadd.f32 %v1664_v9, %v2104_v44  ;;  %v1067_v27 = vmax.f32 %v977_v15, 0.0  ;;  %v872_v8 = vadd.f32 %v2085_v16, %v2104_v44  ;;  %v875_v15 = vadd.f32 %v2087_v21, %v2104_v44 }
 0x12b   : > { %v1666_v18 = vpop.f32.mrf.mxu0  ;;  %v979_v19 = vpop.f32.mrf.mxu1  ;;  %v867_v21 = vadd.f32 %v2083_v11, %v2104_v44 }
 0x12c   : > { %v1667_v20 = vadd.f32 %v1666_v18, %v1665_v12  ;;  %v980_v22 = vadd.f32 %v979_v19, %v819_v17  ;;  %v985_v25 = vadd.f32 %v1752_v0, %v824_v14  ;;  %v1712_v17 = vadd.f32 %v2095_v35, %v2093_v33 }
 0x12d   : > { %v1668_v23 = vpop.f32.mrf.mxu0  ;;  %v1756_v24 = vpop.f32.mrf.mxu1  ;;  %v864_v18 = vadd.f32 %v2081_v6, %v2104_v44 }
 0x12e   : > { %v827_v28 = vadd.f32 %v1667_v20, %v2104_v44  ;;  %v1068_v29 = vmax.f32 %v980_v22, 0.0  ;;  %v1069_v42 = vmax.f32 %v985_v25, 0.0  ;;  %v1715_v25 = vadd.f32 %v2099_v40, %v2097_v37 }
 0x12f   : > { %v1669_v30 = vpop.f32.mrf.mxu0  ;;  %v992_v32 = vpop.f32.mrf.mxu1  ;;  %v888_v37 = vadd.f32 %v1712_v17, %v2104_v44 }
 0x130   : > { %v988_v34 = vadd.f32 %v1753_v13, %v827_v28  ;;  %v1542_v36 = vpack.c.bf16 %v1068_v29, %v1067_v27  ;;  %v1670_v38 = vadd.f32 %v1669_v30, %v1668_v23 }
 0x131   : > { %v1671_v39 = vpop.f32.mrf.mxu0  ;;  %v1757_v41 = vpop.f32.mrf.mxu1 }
 0x132   : > { %v1070_v45 = vmax.f32 %v988_v34, 0.0  ;;  %1594 = vst [vmem:[%s2114_s12 + $0x30] sm:$0xff] %v1542_v36   ;;  %v832_v46 = vadd.f32 %v1670_v38, %v2104_v44 }
 0x133   : > { %v1672_v47 = vpop.f32.mrf.mxu0  ;;  %v995_v49 = vpop.f32.mrf.mxu1 }
 0x134   : > { %v1547_v43 = vpack.c.bf16 %v1070_v45, %v1069_v42  ;;  %v1673_v48 = vadd.f32 %v1672_v47, %v1671_v39  ;;  %v993_v52 = vadd.f32 %v992_v32, %v832_v46 }
 0x135   : > { %v1674_v50 = vpop.f32.mrf.mxu0  ;;  %v2136_v51 = vpop.f32.mrf.mxu1 }
 0x136   : > { %1595 = vst [vmem:[%s2114_s12 + $0x38] sm:$0xff] %v1547_v43   ;;  %v835_v54 = vadd.f32 %v1673_v48, %v2104_v44  ;;  %v1071_v60 = vmax.f32 %v993_v52, 0.0  ;;  %v891_v43 = vadd.f32 %v1715_v25, %v2104_v44 }
 0x137   : > { %v1675_v53 = vpop.f32.mrf.mxu0  ;;  %v1008_v55 = vpop.f32.mrf.mxu1 }
 0x138   : > { %v996_v56 = vadd.f32 %v995_v49, %v835_v54  ;;  %v1676_v57 = vadd.f32 %v1675_v53, %v1674_v50  ;;  %v880_v50 = vadd.f32 %v2089_v26, %v2104_v44 }
 0x139   : > { %v1677_v58 = vpop.f32.mrf.mxu0  ;;  %v2140_v59 = vpop.f32.mrf.mxu1 }
 0x13a   : > { %v1072_v61 = vmax.f32 %v996_v56, 0.0  ;;  %v840_v62 = vadd.f32 %v1676_v57, %v2104_v44 }
 0x13b   : > { %v1678_v63 = vpop.f32.mrf.mxu0  ;;  %v1011_v0 = vpop.f32.mrf.mxu1 }
 0x13c   : > { %v1552_v1 = vpack.c.bf16 %v1072_v61, %v1071_v60  ;;  %v1679_v2 = vadd.f32 %v1678_v63, %v1677_v58  ;;  %v1001_v5 = vadd.f32 %v1756_v24, %v840_v62  ;;  %v883_v61 = vadd.f32 %v2091_v31, %v2104_v44 }
 0x13d   : > { %v1680_v3 = vpop.f32.mrf.mxu0  ;;  %v1764_v4 = vpop.f32.mrf.mxu1 }
 0x13e   : > { %1596 = vst [vmem:[%s2114_s12 + $0x40] sm:$0xff] %v1552_v1   ;;  %v843_v7 = vadd.f32 %v1679_v2, %v2104_v44  ;;  %v1033_v13 = vadd.f32 %v1764_v4, %v872_v8  ;;  %v1073_v22 = vmax.f32 %v1001_v5, 0.0 }
 0x13f   : > { %v1681_v9 = vpop.f32.mrf.mxu0  ;;  %v1024_v10 = vpop.f32.mrf.mxu1 }
 0x140   : > { %v1004_v12 = vadd.f32 %v1757_v41, %v843_v7  ;;  %v1682_v14 = vadd.f32 %v1681_v9, %v1680_v3  ;;  %v1025_v27 = vadd.f32 %v1024_v10, %v864_v18  ;;  %v1081_v6 = vmax.f32 %v1033_v13, 0.0 }
 0x141   : > { %v1683_v19 = vpop.f32.mrf.mxu0  ;;  %v1765_v20 = vpop.f32.mrf.mxu1 }
 0x142   : > { %v1074_v23 = vmax.f32 %v1004_v12, 0.0  ;;  %v848_v16 = vadd.f32 %v1682_v14, %v2104_v44  ;;  %v1036_v24 = vadd.f32 %v1765_v20, %v875_v15  ;;  %v1079_v40 = vmax.f32 %v1025_v27, 0.0 }
 0x143   : > { %v1684_v28 = vpop.f32.mrf.mxu0  ;;  %v1027_v33 = vpop.f32.mrf.mxu1 }
 0x144   : > { %v1557_v35 = vpack.c.bf16 %v1074_v23, %v1073_v22  ;;  %v1082_v29 = vmax.f32 %v1036_v24, 0.0  ;;  %v1685_v30 = vadd.f32 %v1684_v28, %v1683_v19  ;;  %v1028_v32 = vadd.f32 %v1027_v33, %v867_v21 }
 0x145   : > { %v1686_v34 = vpop.f32.mrf.mxu0  ;;  %v1768_v36 = vpop.f32.mrf.mxu1  ;;  %v1009_v38 = vadd.f32 %v1008_v55, %v848_v16 }
 0x146   : > { %1597 = vst [vmem:[%s2114_s12 + $0x48] sm:$0xff] %v1557_v35   ;;  %v1577_v39 = vpack.c.bf16 %v1082_v29, %v1081_v6  ;;  %v851_v41 = vadd.f32 %v1685_v30, %v2104_v44  ;;  %v1080_v42 = vmax.f32 %v1028_v32, 0.0  ;;  %v1049_v47 = vadd.f32 %v1768_v36, %v888_v37 }
 0x147   : > { %v1687_v11 = vpop.f32.mrf.mxu0  ;;  %v1040_v45 = vpop.f32.mrf.mxu1  ;;  %v1075_v53 = vmax.f32 %v1009_v38, 0.0 }
 0x148   : > { %1601 = vst [vmem:[%s2114_s12 + $0x68] sm:$0xff] %v1577_v39   ;;  %v1012_v46 = vadd.f32 %v1011_v0, %v851_v41  ;;  %v1688_v49 = vadd.f32 %v1687_v11, %v1686_v34  ;;  %v1572_v48 = vpack.c.bf16 %v1080_v42, %v1079_v40  ;;  %v1041_v58 = vadd.f32 %v1040_v45, %v880_v50 }
 0x149   : > { %v1689_v52 = vpop.f32.mrf.mxu0  ;;  %v1769_v54 = vpop.f32.mrf.mxu1  ;;  %v1085_v0 = vmax.f32 %v1049_v47, 0.0 }
 0x14a   : > { %v1076_v55 = vmax.f32 %v1012_v46, 0.0  ;;  %v856_v56 = vadd.f32 %v1688_v49, %v2104_v44  ;;  %v1052_v57 = vadd.f32 %v1769_v54, %v891_v43  ;;  %1600 = vst [vmem:[%s2114_s12 + $0x60] sm:$0xff] %v1572_v48   ;;  %v1083_v7 = vmax.f32 %v1041_v58, 0.0 }
 0x14b   : > { %v1690_v60 = vpop.f32.mrf.mxu0  ;;  %v1043_v62 = vpop.f32.mrf.mxu1 }
 0x14c   : > { %v1562_v63 = vpack.c.bf16 %v1076_v55, %v1075_v53  ;;  %v1086_v26 = vmax.f32 %v1052_v57, 0.0  ;;  %v1691_v1 = vadd.f32 %v1690_v60, %v1689_v52  ;;  %v1044_v2 = vadd.f32 %v1043_v62, %v883_v61 }
 0x14d   : > { %v1017_v3 = vadd.f32 %v2136_v51, %v856_v56 }
 0x14e   : > { %1598 = vst [vmem:[%s2114_s12 + $0x50] sm:$0xff] %v1562_v63   ;;  %v1587_v4 = vpack.c.bf16 %v1086_v26, %v1085_v0  ;;  %v859_v5 = vadd.f32 %v1691_v1, %v2104_v44  ;;  %v1084_v8 = vmax.f32 %v1044_v2, 0.0 }
 0x14f   : > { %v1077_v10 = vmax.f32 %v1017_v3, 0.0 }
 0x150   : > { %1603 = vst [vmem:[%s2114_s12 + $0x78] sm:$0xff] %v1587_v4   ;;  %v1020_v9 = vadd.f32 %v2140_v59, %v859_v5  ;;  %v1582_v31 = vpack.c.bf16 %v1084_v8, %v1083_v7 }
 0x152   : > { %v1078_v12 = vmax.f32 %v1020_v9, 0.0  ;;  %1602 = vst [vmem:[%s2114_s12 + $0x70] sm:$0xff] %v1582_v31  }
 0x154   : > { %v1567_v13 = vpack.c.bf16 %v1078_v12, %v1077_v10 }
 0x156   : > { %1599 = vst [vmem:[%s2114_s12 + $0x58] sm:$0xff] %v1567_v13  }
 0x157 PF: > { %s13_s14 = sadd.s32 1, %s1915_s14   ;;  %s2189_s12 = smov %s1911_s13 }
 0x158   : > { %p10_p5 = scmp.ge.s32.totalorder %s13_s14, 4   ;;  %s2190_s13 = smov %s2192_s15 }
 0x15a   :  { %12 = sbr.rel (!%p10_p5) target bundleno = 2 (0x2), region = 68 }

// kernel: _lambda_.9
= control target key start
LH: loop header
LB: loop body
LE: loop exit
PB: predicated region body
PF: predicated region fallthrough
CT: control target
= control target key end

     0   :  { %v822_v0 = vmov 0   ;;  %vm399_vm0 = vcmask 392192   ;;  %s1087_s1 = inlined_call_operand.vmem [shape: bf16[432,128], index: 1, kind: input, shape index: {}]   ;;  %s1088_s0 = inlined_call_operand.vmem [shape: bf16[112,432], index: 0, kind: input, shape index: {}]   ;;  %s1089_s2 = inlined_call_operand.vmem [shape: f32[1,128], index: 2, kind: input, shape index: {}]   ;;  %s1090_s3 = inlined_call_operand.vmem [shape: f32[112,128], index: 3, kind: output, shape index: {}]  }
   0x1   :  { %510 = vmatprep.subr.bf16.mxu1 %v822_v0  ;;  %v753_v1 = vld [vmem:[%s1087_s1 + $0x78] sm:$0xff]   ;;  %v756_v4 = vld [vmem:[%s1087_s1 + $0x70] sm:$0xff]   ;;  %v759_v7 = vld [vmem:[%s1087_s1 + $0x68] sm:$0xff]  }
   0x2   :  { %v754_v2 = vld [vmem:[%s1087_s1 + $0xb8] sm:$0xff]   ;;  %694 = vmatprep.subr.bf16.mxu0 %v753_v1  ;;  %v757_v5 = vld [vmem:[%s1087_s1 + $0xb0] sm:$0xff]   ;;  %v760_v8 = vld [vmem:[%s1087_s1 + $0xa8] sm:$0xff]  }
   0x3   :  { %v755_v3 = vld [vmem:[%s1087_s1 + $0x38] sm:$0xff]   ;;  %511 = vmatpush1.bf16.msra.mxu1 %v754_v2  ;;  %v758_v6 = vld [vmem:[%s1087_s1 + $0x30] sm:$0xff]   ;;  %v761_v9 = vld [vmem:[%s1087_s1 + $0x28] sm:$0xff]  }
   0x4   :  { %695 = vmatpush3.bf16.msra.mxu0 %v755_v3  ;;  %512 = vmatprep.subr.bf16.mxu1 %v822_v0  ;;  %v762_v10 = vld [vmem:[%s1087_s1 + $0x60] sm:$0xff]   ;;  %v765_v13 = vld [vmem:[%s1087_s1 + $0x58] sm:$0xff]   ;;  %v768_v16 = vld [vmem:[%s1087_s1 + $0x50] sm:$0xff]  }
   0x5   :  { %696 = vmatprep.subr.bf16.mxu0 %v756_v4  ;;  %v763_v11 = vld [vmem:[%s1087_s1 + $0xa0] sm:$0xff]   ;;  %v766_v14 = vld [vmem:[%s1087_s1 + $0x98] sm:$0xff]   ;;  %v769_v17 = vld [vmem:[%s1087_s1 + $0x90] sm:$0xff]  }
   0x6   :  { %v764_v12 = vld [vmem:[%s1087_s1 + $0x20] sm:$0xff]   ;;  %v767_v15 = vld [vmem:[%s1087_s1 + $0x18] sm:$0xff]   ;;  %v770_v18 = vld [vmem:[%s1087_s1 + $0x10] sm:$0xff]  }
   0x7   :  { %513 = vmatpush1.bf16.msra.mxu1 %v757_v5  ;;  %v771_v19 = vld [vmem:[%s1087_s1 + $0x48] sm:$0xff]   ;;  %v774_v22 = vld [vmem:[%s1087_s1 + $0x40] sm:$0xff]   ;;  %v780_v28 = vld [vmem:[%s1087_s1 + $0xd0] sm:$0xff]  }
   0x8   :  { %697 = vmatpush3.bf16.msra.mxu0 %v758_v6  ;;  %514 = vmatprep.subr.bf16.mxu1 %v822_v0  ;;  %v772_v20 = vld [vmem:[%s1087_s1 + $0x88] sm:$0xff]   ;;  %v779_v23 = vld [vmem:[%s1088_s0 + $0x4] ss:$16 sps:$4 sm:$0xff]   ;;  %v777_v26 = vld [vmem:[%s1088_s0] ss:$16 sps:$4 sm:$0xff]  }
   0x9   :  { %698 = vmatprep.subr.bf16.mxu0 %v759_v7  ;;  %v773_v21 = vld [vmem:[%s1087_s1 + $0x8] sm:$0xff]   ;;  %v775_v24 = vld [vmem:[%s1087_s1 + $0x80] sm:$0xff]   ;;  %453 = vmatprep.mubr.bf16.mxu0 %v779_v23 }
   0xa   :  { %v776_v25 = vld [vmem:[%s1087_s1] sm:$0xff]   ;;  %v788_v27 = vld [vmem:[%s1088_s0 + $0xc] ss:$16 sps:$4 sm:$0xff]   ;;  %v786_v34 = vld [vmem:[%s1088_s0 + $0x8] ss:$16 sps:$4 sm:$0xff]  }
   0xb   :  { %515 = vmatpush1.bf16.msra.mxu1 %v760_v8  ;;  %v782_v29 = vld [vmem:[%s1088_s0 + $0x24] ss:$16 sps:$4 sm:$0xff]   ;;  %687 = vmatprep.mubr.msk.bf16.mxu1 %vm399_vm0, %v788_v27  ;;  %v781_v30 = vld [vmem:[%s1087_s1 + $0xc8] sm:$0xff]   ;;  %v784_v31 = vld [vmem:[%s1088_s0 + $0x20] ss:$16 sps:$4 sm:$0xff]  }
   0xc   :  { %699 = vmatpush3.bf16.msra.mxu0 %v761_v9  ;;  %516 = vmatprep.subr.bf16.mxu1 %v822_v0  ;;  %v785_v32 = vld [vmem:[%s1087_s1 + $0xc0] sm:$0xff]   ;;  %v792_v35 = vld [vmem:[%s1088_s0 + $0x2c] ss:$16 sps:$4 sm:$0xff]   ;;  %v794_v38 = vld [vmem:[%s1088_s0 + $0x28] ss:$16 sps:$4 sm:$0xff]  }
   0xd   :  { %700 = vmatprep.subr.bf16.mxu0 %v762_v10  ;;  %v789_v33 = vld [vmem:[%s1088_s0 + $0x44] ss:$16 sps:$4 sm:$0xff]   ;;  %v791_v36 = vld [vmem:[%s1088_s0 + $0x40] ss:$16 sps:$4 sm:$0xff]   ;;  %v798_v39 = vld [vmem:[%s1088_s0 + $0x4c] ss:$16 sps:$4 sm:$0xff]  }
   0xe   :  { %v795_v37 = vld [vmem:[%s1088_s0 + $0x64] ss:$16 sps:$4 sm:$0xff]   ;;  %v797_v40 = vld [vmem:[%s1088_s0 + $0x60] ss:$16 sps:$4 sm:$0xff]   ;;  %v800_v42 = vld [vmem:[%s1088_s0 + $0x48] ss:$16 sps:$4 sm:$0xff]  }
   0xf   :  { %517 = vmatpush1.bf16.msra.mxu1 %v763_v11  ;;  %v801_v41 = vld [vmem:[%s1088_s0 + $0x84] ss:$16 sps:$4 sm:$0xff]   ;;  %v804_v43 = vld [vmem:[%s1088_s0 + $0x6c] ss:$16 sps:$4 sm:$0xff]   ;;  %v803_v44 = vld [vmem:[%s1088_s0 + $0x80] ss:$16 sps:$4 sm:$0xff]  }
  0x10   :  { %701 = vmatpush3.bf16.msra.mxu0 %v764_v12  ;;  %518 = vmatprep.subr.bf16.mxu1 %v822_v0  ;;  %v807_v45 = vld [vmem:[%s1088_s0 + $0xa4] ss:$16 sps:$4 sm:$0xff]   ;;  %v806_v46 = vld [vmem:[%s1088_s0 + $0x68] ss:$16 sps:$4 sm:$0xff]   ;;  %v810_v47 = vld [vmem:[%s1088_s0 + $0x8c] ss:$16 sps:$4 sm:$0xff]  }
  0x11   :  { %702 = vmatprep.subr.bf16.mxu0 %v765_v13  ;;  %v809_v48 = vld [vmem:[%s1088_s0 + $0xa0] ss:$16 sps:$4 sm:$0xff]   ;;  %v813_v49 = vld [vmem:[%s1088_s0 + $0xc4] ss:$16 sps:$4 sm:$0xff]   ;;  %v812_v50 = vld [vmem:[%s1088_s0 + $0x88] ss:$16 sps:$4 sm:$0xff]  }
  0x12   :  { %v816_v51 = vld [vmem:[%s1088_s0 + $0xac] ss:$16 sps:$4 sm:$0xff]   ;;  %v815_v52 = vld [vmem:[%s1088_s0 + $0xc0] ss:$16 sps:$4 sm:$0xff]   ;;  %v818_v53 = vld [vmem:[%s1088_s0 + $0xa8] ss:$16 sps:$4 sm:$0xff]  }
  0x13   :  { %519 = vmatpush1.bf16.msra.mxu1 %v766_v14  ;;  %v819_v54 = vld [vmem:[%s1088_s0 + $0xcc] ss:$16 sps:$4 sm:$0xff]   ;;  %v821_v55 = vld [vmem:[%s1088_s0 + $0xc8] ss:$16 sps:$4 sm:$0xff]   ;;  %v1029_v61 = vld [vmem:[%s1089_s2] ss:$0 sm:$0xff] }
  0x14   :  { %703 = vmatpush3.bf16.msra.mxu0 %v767_v15  ;;  %520 = vmatprep.subr.bf16.mxu1 %v822_v0 }
  0x15   :  { %704 = vmatprep.subr.bf16.mxu0 %v768_v16 }
  0x17   :  { %521 = vmatpush1.bf16.msra.mxu1 %v769_v17 }
  0x18   :  { %705 = vmatpush3.bf16.msra.mxu0 %v770_v18  ;;  %522 = vmatprep.subr.bf16.mxu1 %v822_v0 }
  0x19   :  { %706 = vmatprep.subr.bf16.mxu0 %v771_v19 }
  0x1b   :  { %523 = vmatpush1.bf16.msra.mxu1 %v772_v20 }
  0x1c   :  { %707 = vmatpush3.bf16.msra.mxu0 %v773_v21  ;;  %524 = vmatprep.subr.bf16.mxu1 %v822_v0 }
  0x1d   :  { %708 = vmatprep.subr.bf16.mxu0 %v774_v22 }
  0x1f   :  { %525 = vmatpush1.bf16.msra.mxu1 %v775_v24 }
  0x20   :  { %709 = vmatpush3.bf16.msra.mxu0 %v776_v25  ;;  %536 = vmatprep.subr.bf16.mxu1 %v822_v0 }
  0x23   :  { %454 = vmatmul.mubr.bf16.vlgmr.msra.gmra.mxu0 %v777_v26  ;;  %537 = vmatpush2.bf16.msra.mxu1 %v780_v28 }
  0x24   :  { %538 = vmatprep.subr.bf16.mxu1 %v822_v0  ;;  %461 = vmatprep.mubr.bf16.mxu0 %v782_v29 }
  0x27   :  { %539 = vmatpush2.bf16.msra.mxu1 %v781_v30 }
  0x28   :  { %540 = vmatprep.subr.bf16.mxu1 %v822_v0 }
  0x2b   :  { %462 = vmatmul.mubr.bf16.gmra.mxu0 %v784_v31  ;;  %541 = vmatpush2.bf16.msra.mxu1 %v785_v32 }
  0x2c   :  { %469 = vmatprep.mubr.bf16.mxu0 %v789_v33 }
  0x2e   :  { %543 = vmatmul.mubr.bf16.vlgmr.msra.gmra.mxu1 %v786_v34 }
  0x2f   :  { %688 = vmatprep.mubr.msk.bf16.mxu1 %vm399_vm0, %v792_v35 }
  0x33   :  { %470 = vmatmul.mubr.bf16.gmra.mxu0 %v791_v36 }
  0x34   :  { %477 = vmatprep.mubr.bf16.mxu0 %v795_v37 }
  0x36   :  { %551 = vmatmul.mubr.bf16.gmra.mxu1 %v794_v38 }
  0x37   :  { %689 = vmatprep.mubr.msk.bf16.mxu1 %vm399_vm0, %v798_v39 }
  0x3b   :  { %478 = vmatmul.mubr.bf16.gmra.mxu0 %v797_v40 }
  0x3c   :  { %485 = vmatprep.mubr.bf16.mxu0 %v801_v41 }
  0x3e   :  { %559 = vmatmul.mubr.bf16.gmra.mxu1 %v800_v42 }
  0x3f   :  { %690 = vmatprep.mubr.msk.bf16.mxu1 %vm399_vm0, %v804_v43 }
  0x43   :  { %486 = vmatmul.mubr.bf16.gmra.mxu0 %v803_v44 }
  0x44   :  { %493 = vmatprep.mubr.bf16.mxu0 %v807_v45 }
  0x46   :  { %567 = vmatmul.mubr.bf16.gmra.mxu1 %v806_v46 }
  0x47   :  { %691 = vmatprep.mubr.msk.bf16.mxu1 %vm399_vm0, %v810_v47 }
  0x4b   :  { %494 = vmatmul.mubr.bf16.gmra.mxu0 %v809_v48 }
  0x4c   :  { %501 = vmatprep.mubr.bf16.mxu0 %v813_v49 }
  0x4e   :  { %575 = vmatmul.mubr.bf16.gmra.mxu1 %v812_v50 }
  0x4f   :  { %692 = vmatprep.mubr.msk.bf16.mxu1 %vm399_vm0, %v816_v51 }
  0x53   :  { %502 = vmatmul.mubr.bf16.gmra.mxu0 %v815_v52 }
  0x56   :  { %583 = vmatmul.mubr.bf16.gmra.mxu1 %v818_v53 }
  0x57   :  { %693 = vmatprep.mubr.msk.bf16.mxu1 %vm399_vm0, %v819_v54 }
  0x5e   :  { %591 = vmatmul.mubr.bf16.gmra.mxu1 %v821_v55 }
  0xe3   :  { %v710_v56 = vpop.f32.mrf.mxu0 }
  0xe5   :  { %v711_v57 = vpop.f32.mrf.mxu0 }
  0xe6   :  { %v712_v59 = vadd.f32 %v711_v57, %v710_v56 }
  0xe7   :  { %v713_v58 = vpop.f32.mrf.mxu0 }
  0xe8   :  { %v456_v1 = vadd.f32 %v712_v59, %v1029_v61 }
  0xe9   :  { %v714_v60 = vpop.f32.mrf.mxu0 }
  0xea   :  { %v715_v63 = vadd.f32 %v714_v60, %v713_v58 }
  0xeb   :  { %v716_v62 = vpop.f32.mrf.mxu0 }
  0xec   :  { %v459_v9 = vadd.f32 %v715_v63, %v1029_v61 }
  0xed   :  { %v717_v0 = vpop.f32.mrf.mxu0 }
  0xee   :  { %v544_v2 = vpop.f32.mrf.mxu1  ;;  %v718_v6 = vadd.f32 %v717_v0, %v716_v62 }
  0xef   :  { %v545_v3 = vadd.f32 %v544_v2, %v456_v1  ;;  %v719_v4 = vpop.f32.mrf.mxu0 }
  0xf0   :  { %v546_v5 = vpop.f32.mrf.mxu1  ;;  %v464_v17 = vadd.f32 %v718_v6, %v1029_v61 }
  0xf1   :  { %v599_v7 = vmax.f32 %v545_v3, 0.0  ;;  %v720_v8 = vpop.f32.mrf.mxu0 }
  0xf2   :  { %v547_v10 = vpop.f32.mrf.mxu1  ;;  %v721_v14 = vadd.f32 %v720_v8, %v719_v4 }
  0xf3   :  { %613 = vst [vmem:[%s1090_s3] sm:$0xff] %v599_v7  ;;  %v548_v11 = vadd.f32 %v547_v10, %v459_v9  ;;  %v722_v12 = vpop.f32.mrf.mxu0 }
  0xf4   :  { %v549_v13 = vpop.f32.mrf.mxu1  ;;  %v467_v25 = vadd.f32 %v721_v14, %v1029_v61 }
  0xf5   :  { %v600_v15 = vmax.f32 %v548_v11, 0.0  ;;  %v723_v16 = vpop.f32.mrf.mxu0 }
  0xf6   :  { %v552_v18 = vpop.f32.mrf.mxu1  ;;  %v724_v22 = vadd.f32 %v723_v16, %v722_v12 }
  0xf7   :  { %614 = vst [vmem:[%s1090_s3 + $0x8] sm:$0xff] %v600_v15  ;;  %v553_v19 = vadd.f32 %v552_v18, %v464_v17  ;;  %v725_v20 = vpop.f32.mrf.mxu0 }
  0xf8   :  { %v554_v21 = vpop.f32.mrf.mxu1  ;;  %v472_v33 = vadd.f32 %v724_v22, %v1029_v61 }
  0xf9   :  { %v601_v23 = vmax.f32 %v553_v19, 0.0  ;;  %v726_v24 = vpop.f32.mrf.mxu0 }
  0xfa   :  { %v555_v26 = vpop.f32.mrf.mxu1  ;;  %v727_v30 = vadd.f32 %v726_v24, %v725_v20 }
  0xfb   :  { %615 = vst [vmem:[%s1090_s3 + $0x10] sm:$0xff] %v601_v23  ;;  %v556_v27 = vadd.f32 %v555_v26, %v467_v25  ;;  %v728_v28 = vpop.f32.mrf.mxu0 }
  0xfc   :  { %v557_v29 = vpop.f32.mrf.mxu1  ;;  %v475_v41 = vadd.f32 %v727_v30, %v1029_v61 }
  0xfd   :  { %v602_v31 = vmax.f32 %v556_v27, 0.0  ;;  %v729_v32 = vpop.f32.mrf.mxu0 }
  0xfe   :  { %v560_v34 = vpop.f32.mrf.mxu1  ;;  %v730_v38 = vadd.f32 %v729_v32, %v728_v28 }
  0xff   :  { %616 = vst [vmem:[%s1090_s3 + $0x18] sm:$0xff] %v602_v31  ;;  %v561_v35 = vadd.f32 %v560_v34, %v472_v33  ;;  %v731_v36 = vpop.f32.mrf.mxu0 }
 0x100   :  { %v562_v37 = vpop.f32.mrf.mxu1  ;;  %v480_v49 = vadd.f32 %v730_v38, %v1029_v61 }
 0x101   :  { %v603_v39 = vmax.f32 %v561_v35, 0.0  ;;  %v732_v40 = vpop.f32.mrf.mxu0 }
 0x102   :  { %v563_v42 = vpop.f32.mrf.mxu1  ;;  %v733_v46 = vadd.f32 %v732_v40, %v731_v36 }
 0x103   :  { %617 = vst [vmem:[%s1090_s3 + $0x20] sm:$0xff] %v603_v39  ;;  %v564_v43 = vadd.f32 %v563_v42, %v475_v41  ;;  %v734_v44 = vpop.f32.mrf.mxu0 }
 0x104   :  { %v565_v45 = vpop.f32.mrf.mxu1  ;;  %v483_v57 = vadd.f32 %v733_v46, %v1029_v61 }
 0x105   :  { %v604_v47 = vmax.f32 %v564_v43, 0.0  ;;  %v735_v48 = vpop.f32.mrf.mxu0 }
 0x106   :  { %v568_v50 = vpop.f32.mrf.mxu1  ;;  %v736_v54 = vadd.f32 %v735_v48, %v734_v44 }
 0x107   :  { %618 = vst [vmem:[%s1090_s3 + $0x28] sm:$0xff] %v604_v47  ;;  %v569_v51 = vadd.f32 %v568_v50, %v480_v49  ;;  %v737_v52 = vpop.f32.mrf.mxu0 }
 0x108   :  { %v570_v53 = vpop.f32.mrf.mxu1  ;;  %v488_v2 = vadd.f32 %v736_v54, %v1029_v61 }
 0x109   :  { %v605_v55 = vmax.f32 %v569_v51, 0.0  ;;  %v738_v56 = vpop.f32.mrf.mxu0 }
 0x10a   :  { %v571_v58 = vpop.f32.mrf.mxu1  ;;  %v739_v63 = vadd.f32 %v738_v56, %v737_v52 }
 0x10b   :  { %619 = vst [vmem:[%s1090_s3 + $0x30] sm:$0xff] %v605_v55  ;;  %v572_v59 = vadd.f32 %v571_v58, %v483_v57  ;;  %v740_v60 = vpop.f32.mrf.mxu0 }
 0x10c   :  { %v573_v62 = vpop.f32.mrf.mxu1  ;;  %v491_v10 = vadd.f32 %v739_v63, %v1029_v61 }
 0x10d   :  { %v606_v0 = vmax.f32 %v572_v59, 0.0  ;;  %v741_v1 = vpop.f32.mrf.mxu0 }
 0x10e   :  { %v576_v3 = vpop.f32.mrf.mxu1  ;;  %v742_v7 = vadd.f32 %v741_v1, %v740_v60 }
 0x10f   :  { %620 = vst [vmem:[%s1090_s3 + $0x38] sm:$0xff] %v606_v0  ;;  %v577_v4 = vadd.f32 %v576_v3, %v488_v2  ;;  %v743_v5 = vpop.f32.mrf.mxu0 }
 0x110   :  { %v578_v6 = vpop.f32.mrf.mxu1  ;;  %v496_v18 = vadd.f32 %v742_v7, %v1029_v61 }
 0x111   :  { %v607_v8 = vmax.f32 %v577_v4, 0.0  ;;  %v744_v9 = vpop.f32.mrf.mxu0 }
 0x112   :  { %v579_v11 = vpop.f32.mrf.mxu1  ;;  %v745_v15 = vadd.f32 %v744_v9, %v743_v5 }
 0x113   :  { %621 = vst [vmem:[%s1090_s3 + $0x40] sm:$0xff] %v607_v8  ;;  %v580_v12 = vadd.f32 %v579_v11, %v491_v10  ;;  %v746_v13 = vpop.f32.mrf.mxu0 }
 0x114   :  { %v581_v14 = vpop.f32.mrf.mxu1  ;;  %v499_v25 = vadd.f32 %v745_v15, %v1029_v61 }
 0x115   :  { %v608_v16 = vmax.f32 %v580_v12, 0.0  ;;  %v747_v17 = vpop.f32.mrf.mxu0 }
 0x116   :  { %v584_v19 = vpop.f32.mrf.mxu1  ;;  %v748_v23 = vadd.f32 %v747_v17, %v746_v13 }
 0x117   :  { %622 = vst [vmem:[%s1090_s3 + $0x48] sm:$0xff] %v608_v16  ;;  %v585_v20 = vadd.f32 %v584_v19, %v496_v18  ;;  %v749_v21 = vpop.f32.mrf.mxu0 }
 0x118   :  { %v586_v22 = vpop.f32.mrf.mxu1  ;;  %v504_v32 = vadd.f32 %v748_v23, %v1029_v61 }
 0x119   :  { %v609_v24 = vmax.f32 %v585_v20, 0.0  ;;  %v750_v26 = vpop.f32.mrf.mxu0 }
 0x11a   :  { %v587_v27 = vpop.f32.mrf.mxu1  ;;  %v751_v30 = vadd.f32 %v750_v26, %v749_v21 }
 0x11b   :  { %623 = vst [vmem:[%s1090_s3 + $0x50] sm:$0xff] %v609_v24  ;;  %v588_v28 = vadd.f32 %v587_v27, %v499_v25 }
 0x11c   :  { %v589_v29 = vpop.f32.mrf.mxu1  ;;  %v507_v37 = vadd.f32 %v751_v30, %v1029_v61 }
 0x11d   :  { %v610_v31 = vmax.f32 %v588_v28, 0.0 }
 0x11e   :  { %v592_v33 = vpop.f32.mrf.mxu1 }
 0x11f   :  { %624 = vst [vmem:[%s1090_s3 + $0x58] sm:$0xff] %v610_v31  ;;  %v593_v34 = vadd.f32 %v592_v33, %v504_v32 }
 0x120   :  { %v594_v35 = vpop.f32.mrf.mxu1 }
 0x121   :  { %v611_v36 = vmax.f32 %v593_v34, 0.0 }
 0x122   :  { %v595_v38 = vpop.f32.mrf.mxu1 }
 0x123   :  { %625 = vst [vmem:[%s1090_s3 + $0x60] sm:$0xff] %v611_v36  ;;  %v596_v39 = vadd.f32 %v595_v38, %v507_v37 }
 0x124   :  { %v597_v40 = vpop.f32.mrf.mxu1 }
 0x125   :  { %v612_v41 = vmax.f32 %v596_v39, 0.0 }
 0x127   :  { %626 = vst [vmem:[%s1090_s3 + $0x68] sm:$0xff] %v612_v41 }

</bundles_post_ra>
